<compile_context>
chip_gen: v7x
topology: tpu7x:2x2x1
jax: 0.10.0
libtpu: 0.0.40
codegen_flags: <defaults>
</compile_context>

<pallas_src>
import jax
import jax.numpy as jnp
from jax import lax
from jax.experimental import pallas as pl
from jax.experimental.pallas import tpu as pltpu

# ---- small synthetic config (matches config.model.* / config.tokenizer.*) ----
D_MODEL = 32           # config.model.d_model
N_HEAD = 4             # config.model.n_head
HEAD_DIM = D_MODEL // N_HEAD
MLP_SCALE = 4          # config.model.mlp_scale_factor
MLP_HIDDEN = MLP_SCALE * D_MODEL        # 128
N_LAYER = 2            # config.model.n_layer
VOCAB = 64             # config.tokenizer.vocab_size
VOCAB_PAD = 128        # lane-dense lm_head / logits (pad sliced off in glue)
CONTEXT = 16           # config.model.context_length
LN_EPS = 1e-5
NEG_INF = -1e30        # finite mask constant (avoids inf arithmetic corner cases)

# row layout of the per-layer (8, 128) f32 "vector slab" (LN params + biases)
ROW_LN1_W, ROW_LN1_B, ROW_LN2_W, ROW_LN2_B = 0, 1, 2, 3
ROW_B_PROJ, ROW_B_FC2, ROW_B_QKV, ROW_B_FC = 4, 5, 6, 7


def _layer_norm(x, w, b):
    mu = jnp.mean(x, axis=-1, keepdims=True)
    xc = x - mu
    var = jnp.mean(xc * xc, axis=-1, keepdims=True)
    return xc * lax.rsqrt(var + LN_EPS) * w + b


# ----------------------------- fused Pallas kernel ---------------------------
def _make_kernel(B, T, last_only):
    """Grid = (layer,).  All weights VMEM-resident; activation carried across layers in a
    VMEM scratch.  Batch is folded into the rows of a single (B*T, D) block; a precomputed
    additive mask enforces per-sequence causal attention."""
    R = B * T
    D = D_MODEL
    H = N_HEAD
    hd = HEAD_DIM
    scale = 1.0 / (hd ** 0.5)

    def kernel(x_ref, mask_ref, w_qkv_ref, w_proj_ref, w_fc_ref, w_fc2_ref,
               vec_ref, lnf_ref, w_head_ref, out_ref, x_acc):
        layer = pl.program_id(0)
        n_layer = pl.num_programs(0)

        @pl.when(layer == 0)
        def _():
            x_acc[...] = x_ref[...]                    # load embeddings once

        x = x_acc[...]                                 # (R, D) f32, VMEM-resident
        w_qkv = w_qkv_ref[layer]                       # (D, 3D)    bf16
        w_proj = w_proj_ref[layer]                     # (H, hd, D) bf16, head-major
        w_fc = w_fc_ref[layer]                         # (D, MLP)   bf16
        w_fc2 = w_fc2_ref[layer]                       # (MLP, D)   bf16
        vec = vec_ref[layer]                           # (8, 128)   f32

        ln1_w = vec[ROW_LN1_W:ROW_LN1_W + 1, :D]
        ln1_b = vec[ROW_LN1_B:ROW_LN1_B + 1, :D]
        ln2_w = vec[ROW_LN2_W:ROW_LN2_W + 1, :D]
        ln2_b = vec[ROW_LN2_B:ROW_LN2_B + 1, :D]
        b_proj = vec[ROW_B_PROJ:ROW_B_PROJ + 1, :D]
        b_fc2 = vec[ROW_B_FC2:ROW_B_FC2 + 1, :D]
        b_qkv = vec[ROW_B_QKV:ROW_B_QKV + 1, :3 * D]
        b_fc = vec[ROW_B_FC:ROW_B_FC + 1, :MLP_HIDDEN]

        # --- causal multi-head self-attention (batched over heads, mask hoisted) ---
        h1 = _layer_norm(x, ln1_w, ln1_b)
        qkv = jnp.dot(h1.astype(jnp.bfloat16), w_qkv,
                      preferred_element_type=jnp.float32) + b_qkv        # (R, 3D)

        def split_heads(off):
            # lane slices stacked on a new leading head axis (no lane-splitting reshape)
            return jnp.stack(
                [qkv[:, off + i * hd: off + (i + 1) * hd] for i in range(H)],
                axis=0).astype(jnp.bfloat16)                             # (H, R, hd)

        q = split_heads(0)
        k = split_heads(D)
        v = split_heads(2 * D)

        scores = jnp.einsum('htd,hsd->hts', q, k,
                            preferred_element_type=jnp.float32) * scale  # (H, R, R)
        scores = scores + mask_ref[...][None]                            # hoisted mask
        m = jnp.max(scores, axis=-1, keepdims=True)
        p = jnp.exp(scores - m)
        p = p * pl.reciprocal(jnp.sum(p, axis=-1, keepdims=True), approx=True)
        ctx = jnp.einsum('hts,hsd->htd', p.astype(jnp.bfloat16), v,
                         preferred_element_type=jnp.float32)             # (H, R, hd)
        # head recombination fused into the projection (head-major w_proj, no transpose)
        attn_h = jnp.einsum('htd,hde->hte', ctx.astype(jnp.bfloat16), w_proj,
                            preferred_element_type=jnp.float32)          # (H, R, D)
        x = x + jnp.sum(attn_h, axis=0) + b_proj

        # --- MLP ---
        h2 = _layer_norm(x, ln2_w, ln2_b)
        f = jnp.dot(h2.astype(jnp.bfloat16), w_fc,
                    preferred_element_type=jnp.float32) + b_fc
        f = jax.nn.gelu(f, approximate=True)    # tanh-approx GELU (config.model.activation)
        f = jnp.dot(f.astype(jnp.bfloat16), w_fc2,
                    preferred_element_type=jnp.float32) + b_fc2
        x = x + f
        x_acc[...] = x

        # --- final LayerNorm + lm_head fused into the last layer step ---
        @pl.when(layer == n_layer - 1)
        def _():
            lnf = lnf_ref[...]
            lnf_w = lnf[0:1, :D]
            lnf_b = lnf[1:2, :D]
            w_head = w_head_ref[...]
            if last_only:
                # decode path: only the last token of each sequence goes through the head
                for b in range(B):
                    xb = x[b * T + T - 1: b * T + T, :]                  # (1, D)
                    hb = _layer_norm(xb, lnf_w, lnf_b)
                    out_ref[b:b + 1, :] = jnp.dot(
                        hb.astype(jnp.bfloat16), w_head,
                        preferred_element_type=jnp.float32)
            else:
                hf = _layer_norm(x, lnf_w, lnf_b)
                out_ref[...] = jnp.dot(hf.astype(jnp.bfloat16), w_head,
                                       preferred_element_type=jnp.float32)

    return kernel


# ----------------------------- wrapper ---------------------------------------
def run_gpt_fused(x, mask, packed, *, last_only):
    B, T, D = x.shape
    R = B * T
    x_flat = x.reshape(R, D)
    out_rows = B if last_only else R
    kernel = _make_kernel(B, T, last_only)
    return pl.pallas_call(
        kernel,
        out_shape=jax.ShapeDtypeStruct((out_rows, VOCAB_PAD), jnp.float32),
        grid=(N_LAYER,),
        in_specs=[
            pl.BlockSpec((R, D), lambda l: (0, 0)),                          # embeddings
            pl.BlockSpec((R, R), lambda l: (0, 0)),                          # additive mask
            pl.BlockSpec((N_LAYER, D, 3 * D), lambda l: (0, 0, 0)),          # qkv weights
            pl.BlockSpec((N_LAYER, N_HEAD, HEAD_DIM, D),
                         lambda l: (0, 0, 0, 0)),                            # proj, head-major
            pl.BlockSpec((N_LAYER, D, MLP_HIDDEN), lambda l: (0, 0, 0)),     # fc weights
            pl.BlockSpec((N_LAYER, MLP_HIDDEN, D), lambda l: (0, 0, 0)),     # fc2 weights
            pl.BlockSpec((N_LAYER, 8, 128), lambda l: (0, 0, 0)),            # LN / bias slab
            pl.BlockSpec((2, 128), lambda l: (0, 0)),                        # ln_f (w, b)
            pl.BlockSpec((D_MODEL, VOCAB_PAD), lambda l: (0, 0)),            # padded lm_head
        ],
        out_specs=pl.BlockSpec((out_rows, VOCAB_PAD), lambda l: (0, 0)),
        scratch_shapes=[pltpu.VMEM((R, D), jnp.float32)],                    # resident activation
        compiler_params=pltpu.CompilerParams(
            dimension_semantics=("arbitrary",)),
    )(x_flat, mask, packed['w_qkv'], packed['w_proj'], packed['w_fc'],
      packed['w_fc2'], packed['vecs'], packed['lnf'], packed['w_head_p'])


def build_attention_mask(B, T):
    """Additive (B*T, B*T) mask: causal within each sequence, NEG_INF across sequences."""
    r = jnp.arange(B * T)
    same_seq = (r[:, None] // T) == (r[None, :] // T)
    causal = (r[:, None] % T) >= (r[None, :] % T)
    return jnp.where(same_seq & causal, 0.0, NEG_INF).astype(jnp.float32)


# ----------------------------- params ----------------------------------------
def init_params(key):
    """Human-readable params mirroring the PyTorch module (weights stored (in, out))."""
    ks = jax.random.split(key, 3 + 8 * N_LAYER)
    std = 0.02
    params = {
        'wte': jax.random.normal(ks[0], (VOCAB, D_MODEL), jnp.float32) * std,
        'wpe': jax.random.normal(ks[1], (CONTEXT, D_MODEL), jnp.float32) * std,
        'w_head': jax.random.normal(ks[2], (D_MODEL, VOCAB), jnp.float32) * std,
        'ln_f_w': jnp.ones((D_MODEL,), jnp.float32),
        'ln_f_b': jnp.zeros((D_MODEL,), jnp.float32),
        'layers': [],
    }
    for l in range(N_LAYER):
        kk = ks[3 + 8 * l: 3 + 8 * (l + 1)]
        params['layers'].append({
            'ln1_w': jnp.ones((D_MODEL,), jnp.float32),
            'ln1_b': jnp.zeros((D_MODEL,), jnp.float32),
            'ln2_w': jnp.ones((D_MODEL,), jnp.float32),
            'ln2_b': jnp.zeros((D_MODEL,), jnp.float32),
            'w_qkv': jax.random.normal(kk[0], (D_MODEL, 3 * D_MODEL), jnp.float32) * std,
            'b_qkv': jax.random.normal(kk[1], (3 * D_MODEL,), jnp.float32) * std,
            'w_proj': jax.random.normal(kk[2], (D_MODEL, D_MODEL), jnp.float32) * std,
            'b_proj': jax.random.normal(kk[3], (D_MODEL,), jnp.float32) * std,
            'w_fc': jax.random.normal(kk[4], (D_MODEL, MLP_HIDDEN), jnp.float32) * std,
            'b_fc': jax.random.normal(kk[5], (MLP_HIDDEN,), jnp.float32) * std,
            'w_fc2': jax.random.normal(kk[6], (MLP_HIDDEN, D_MODEL), jnp.float32) * std,
            'b_fc2': jax.random.normal(kk[7], (D_MODEL,), jnp.float32) * std,
        })
    return params


def pack_params(params):
    """Pack params into the kernel layout: per-segment stacked weight arrays (bf16),
    head-major proj, (8,128) f32 LN/bias slab per layer, vocab-padded lm_head."""
    assert 3 * D_MODEL <= 128 and MLP_HIDDEN <= 128, "vector-slab rows assume <=128 lanes"
    w_qkv, w_proj, w_fc, w_fc2, vecs = [], [], [], [], []
    for lay in params['layers']:
        w_qkv.append(lay['w_qkv'])                                            # (D, 3D)
        w_proj.append(lay['w_proj'].reshape(N_HEAD, HEAD_DIM, D_MODEL))       # (H, hd, D)
        w_fc.append(lay['w_fc'])                                              # (D, MLP)
        w_fc2.append(lay['w_fc2'])                                            # (MLP, D)
        v = jnp.zeros((8, 128), jnp.float32)
        v = v.at[ROW_LN1_W, :D_MODEL].set(lay['ln1_w'])
        v = v.at[ROW_LN1_B, :D_MODEL].set(lay['ln1_b'])
        v = v.at[ROW_LN2_W, :D_MODEL].set(lay['ln2_w'])
        v = v.at[ROW_LN2_B, :D_MODEL].set(lay['ln2_b'])
        v = v.at[ROW_B_PROJ, :D_MODEL].set(lay['b_proj'])
        v = v.at[ROW_B_FC2, :D_MODEL].set(lay['b_fc2'])
        v = v.at[ROW_B_QKV, :3 * D_MODEL].set(lay['b_qkv'])
        v = v.at[ROW_B_FC, :MLP_HIDDEN].set(lay['b_fc'])
        vecs.append(v)
    lnf = jnp.zeros((2, 128), jnp.float32)
    lnf = lnf.at[0, :D_MODEL].set(params['ln_f_w'])
    lnf = lnf.at[1, :D_MODEL].set(params['ln_f_b'])
    w_head_p = jnp.zeros((D_MODEL, VOCAB_PAD), jnp.float32)
    w_head_p = w_head_p.at[:, :VOCAB].set(params['w_head'])
    return {
        'wte': params['wte'],
        'wpe': params['wpe'],
        'w_qkv': jnp.stack(w_qkv).astype(jnp.bfloat16),    # (L, D, 3D)     bf16
        'w_proj': jnp.stack(w_proj).astype(jnp.bfloat16),  # (L, H, hd, D)  bf16
        'w_fc': jnp.stack(w_fc).astype(jnp.bfloat16),      # (L, D, MLP)    bf16
        'w_fc2': jnp.stack(w_fc2).astype(jnp.bfloat16),    # (L, MLP, D)    bf16
        'vecs': jnp.stack(vecs),                           # (L, 8, 128)    f32
        'lnf': lnf,                                        # (2, 128)       f32
        'w_head_p': w_head_p.astype(jnp.bfloat16),         # (D, VOCAB_PAD) bf16
    }


# ----------------------------- forward (mirrors GPT.forward) -----------------
def gpt_forward(idx, packed, targets=None):
    """Returns (logits, loss) like the PyTorch module."""
    B, T = idx.shape
    assert T <= CONTEXT
    tok_emb = jnp.take(packed['wte'], idx, axis=0)            # (B, T, D) embedding gather (glue)
    pos_emb = packed['wpe'][:T][None, :, :]
    x = tok_emb + pos_emb                                     # dropout: identity at inference
    mask = build_attention_mask(B, T)

    if targets is not None:
        logits_flat = run_gpt_fused(x, mask, packed, last_only=False)   # (B*T, VOCAB_PAD)
        logits = logits_flat[:, :VOCAB].reshape(B, T, VOCAB)
        # TODO(synk): for realistic vocab sizes, fuse logsumexp/target-gather/mean into the
        # kernel's last grid step instead of materializing full logits in HBM.
        logz = jax.nn.logsumexp(logits, axis=-1)
        tgt_logit = jnp.take_along_axis(logits, targets[..., None], axis=-1)[..., 0]
        loss = jnp.mean(logz - tgt_logit)
        return logits, loss

    logits_last = run_gpt_fused(x, mask, packed, last_only=True)        # (B, VOCAB_PAD)
    return logits_last[:, :VOCAB][:, None, :], None                     # (B, 1, V), None


# ----------------------------- pure-JAX reference (self-check) ---------------
def _ref_forward(idx, params):
    """Reference forward with the same bf16 matmul casts as the kernel."""
    bf = lambda a: a.astype(jnp.bfloat16)
    B, T = idx.shape
    D, H, hd = D_MODEL, N_HEAD, HEAD_DIM
    x = jnp.take(params['wte'], idx, axis=0) + params['wpe'][:T][None]
    causal = jnp.tril(jnp.ones((T, T), dtype=bool))
    for lay in params['layers']:
        h = _layer_norm(x, lay['ln1_w'], lay['ln1_b'])
        qkv = jnp.einsum('btd,de->bte', bf(h), bf(lay['w_qkv']),
                         preferred_element_type=jnp.float32) + lay['b_qkv']
        q = qkv[..., :D].reshape(B, T, H, hd).transpose(0, 2, 1, 3)
        k = qkv[..., D:2 * D].reshape(B, T, H, hd).transpose(0, 2, 1, 3)
        v = qkv[..., 2 * D:].reshape(B, T, H, hd).transpose(0, 2, 1, 3)
        s = jnp.einsum('bhtd,bhsd->bhts', bf(q), bf(k),
                       preferred_element_type=jnp.float32) * (1.0 / hd ** 0.5)
        s = jnp.where(causal[None, None], s, NEG_INF)
        p = jax.nn.softmax(s, axis=-1)
        ctx = jnp.einsum('bhts,bhsd->bhtd', bf(p), bf(v),
                         preferred_element_type=jnp.float32)
        ctx = ctx.transpose(0, 2, 1, 3).reshape(B, T, D)
        x = x + jnp.einsum('btd,de->bte', bf(ctx), bf(lay['w_proj']),
                           preferred_element_type=jnp.float32) + lay['b_proj']
        h2 = _layer_norm(x, lay['ln2_w'], lay['ln2_b'])
        f = jnp.einsum('btd,de->bte', bf(h2), bf(lay['w_fc']),
                       preferred_element_type=jnp.float32) + lay['b_fc']
        f = jax.nn.gelu(f, approximate=True)
        x = x + jnp.einsum('bte,ed->btd', bf(f), bf(lay['w_fc2']),
                           preferred_element_type=jnp.float32) + lay['b_fc2']
    hf = _layer_norm(x, params['ln_f_w'], params['ln_f_b'])
    return jnp.einsum('btd,dv->btv', bf(hf), bf(params['w_head']),
                      preferred_element_type=jnp.float32)


if __name__ == "__main__":
    key = jax.random.PRNGKey(0)
    k_param, k_idx, k_tgt = jax.random.split(key, 3)
    params = init_params(k_param)
    packed = pack_params(params)

    B, T = 2, 8
    idx = jax.random.randint(k_idx, (B, T), 0, VOCAB, dtype=jnp.int32)
    targets = jax.random.randint(k_tgt, (B, T), 0, VOCAB, dtype=jnp.int32)

    # inference path (targets=None): logits for last position only
    logits_last, loss = gpt_forward(idx, packed, targets=None)
    logits_last = jax.block_until_ready(logits_last)
    assert logits_last.shape == (B, 1, VOCAB) and loss is None

    # training path (targets given): full logits + scalar CE loss
    logits_full, ce = gpt_forward(idx, packed, targets=targets)
    jax.block_until_ready((logits_full, ce))
    assert logits_full.shape == (B, T, VOCAB) and ce.shape == ()
    assert bool(jnp.isfinite(ce))

    # numerical self-check against a pure-JAX reference with the same bf16 matmul casts
    ref_logits = _ref_forward(idx, params)
    max_diff = float(jnp.max(jnp.abs(logits_full - ref_logits)))
    assert max_diff < 2e-2, f"kernel/reference mismatch: max|diff|={max_diff}"
    last_diff = float(jnp.max(jnp.abs(logits_last[:, 0, :] - ref_logits[:, -1, :])))
    assert last_diff < 2e-2, f"decode-path mismatch: max|diff|={last_diff}"

    print("KERNEL_OK")
</pallas_src>

<mosaic_0001>
module attributes {stable_mosaic.version = 11 : i64} {
  func.func @kernel(%arg0: i32, %arg1: memref<16x32xf32, #tpu.memory_space<vmem>>, %arg2: memref<16x16xf32, #tpu.memory_space<vmem>>, %arg3: memref<2x32x96xbf16, #tpu.memory_space<vmem>>, %arg4: memref<2x4x8x32xbf16, #tpu.memory_space<vmem>>, %arg5: memref<2x32x128xbf16, #tpu.memory_space<vmem>>, %arg6: memref<2x128x32xbf16, #tpu.memory_space<vmem>>, %arg7: memref<2x8x128xf32, #tpu.memory_space<vmem>>, %arg8: memref<2x128xf32, #tpu.memory_space<vmem>>, %arg9: memref<32x128xbf16, #tpu.memory_space<vmem>>, %arg10: memref<2x128xf32, #tpu.memory_space<vmem>>, %arg11: memref<16x32xf32, #tpu.memory_space<vmem>>) attributes {dimension_semantics = [#tpu.dimension_semantics<arbitrary>], iteration_bounds = array<i64: 2>, scalar_prefetch = 0 : i64, scratch_operands = 1 : i64, tpu.core_type = #tpu.core_type<tc>, window_params = [{pipeline_mode = #tpu.pipeline_mode<synchronous>, transform_indices = @transform_0, window_bounds = array<i64: 16, 32>}, {pipeline_mode = #tpu.pipeline_mode<synchronous>, transform_indices = @transform_1, window_bounds = array<i64: 16, 16>}, {pipeline_mode = #tpu.pipeline_mode<synchronous>, transform_indices = @transform_2, window_bounds = array<i64: 2, 32, 96>}, {pipeline_mode = #tpu.pipeline_mode<synchronous>, transform_indices = @transform_3, window_bounds = array<i64: 2, 4, 8, 32>}, {pipeline_mode = #tpu.pipeline_mode<synchronous>, transform_indices = @transform_4, window_bounds = array<i64: 2, 32, 128>}, {pipeline_mode = #tpu.pipeline_mode<synchronous>, transform_indices = @transform_5, window_bounds = array<i64: 2, 128, 32>}, {pipeline_mode = #tpu.pipeline_mode<synchronous>, transform_indices = @transform_6, window_bounds = array<i64: 2, 8, 128>}, {pipeline_mode = #tpu.pipeline_mode<synchronous>, transform_indices = @transform_7, window_bounds = array<i64: 2, 128>}, {pipeline_mode = #tpu.pipeline_mode<synchronous>, transform_indices = @transform_8, window_bounds = array<i64: 32, 128>}, {pipeline_mode = #tpu.pipeline_mode<synchronous>, transform_indices = @transform_9, window_bounds = array<i64: 2, 128>}]} {
    %c0_i32 = arith.constant 0 : i32
    %0 = arith.cmpi eq, %arg0, %c0_i32 : i32
    %1 = arith.extui %0 : i1 to i32
    %c0_i32_0 = arith.constant 0 : i32
    %2 = arith.cmpi ne, %1, %c0_i32_0 : i32
    scf.if %2 {
      %c0_41 = arith.constant 0 : index
      %c0_42 = arith.constant 0 : index
      %152 = vector.load %arg1[%c0_41, %c0_42] : memref<16x32xf32, #tpu.memory_space<vmem>>, vector<16x32xf32>
      %c0_43 = arith.constant 0 : index
      %c0_44 = arith.constant 0 : index
      %153 = vector.load %arg11[%c0_43, %c0_44] : memref<16x32xf32, #tpu.memory_space<vmem>>, vector<16x32xf32>
      tpu.vector_store %arg11[%c0_43, %c0_44], %152 {strides = array<i32>} : memref<16x32xf32, #tpu.memory_space<vmem>>, vector<16x32xf32>,
    } else {
    }
    %c0 = arith.constant 0 : index
    %c0_1 = arith.constant 0 : index
    %3 = vector.load %arg11[%c0, %c0_1] : memref<16x32xf32, #tpu.memory_space<vmem>>, vector<16x32xf32>
    %4 = arith.index_cast %arg0 : i32 to index
    %c0_2 = arith.constant 0 : index
    %c0_3 = arith.constant 0 : index
    %5 = vector.load %arg3[%4, %c0_2, %c0_3] : memref<2x32x96xbf16, #tpu.memory_space<vmem>>, vector<1x32x96xbf16>
    %6 = vector.shape_cast %5 : vector<1x32x96xbf16> to vector<32x96xbf16>
    %7 = arith.index_cast %arg0 : i32 to index
    %c0_4 = arith.constant 0 : index
    %c0_5 = arith.constant 0 : index
    %c0_6 = arith.constant 0 : index
    %8 = vector.load %arg4[%7, %c0_4, %c0_5, %c0_6] : memref<2x4x8x32xbf16, #tpu.memory_space<vmem>>, vector<1x4x8x32xbf16>
    %9 = vector.shape_cast %8 : vector<1x4x8x32xbf16> to vector<4x8x32xbf16>
    %10 = arith.index_cast %arg0 : i32 to index
    %c0_7 = arith.constant 0 : index
    %c0_8 = arith.constant 0 : index
    %11 = vector.load %arg5[%10, %c0_7, %c0_8] : memref<2x32x128xbf16, #tpu.memory_space<vmem>>, vector<1x32x128xbf16>
    %12 = vector.shape_cast %11 : vector<1x32x128xbf16> to vector<32x128xbf16>
    %13 = arith.index_cast %arg0 : i32 to index
    %c0_9 = arith.constant 0 : index
    %c0_10 = arith.constant 0 : index
    %14 = vector.load %arg6[%13, %c0_9, %c0_10] : memref<2x128x32xbf16, #tpu.memory_space<vmem>>, vector<1x128x32xbf16>
    %15 = vector.shape_cast %14 : vector<1x128x32xbf16> to vector<128x32xbf16>
    %16 = arith.index_cast %arg0 : i32 to index
    %c0_11 = arith.constant 0 : index
    %c0_12 = arith.constant 0 : index
    %17 = vector.load %arg7[%16, %c0_11, %c0_12] : memref<2x8x128xf32, #tpu.memory_space<vmem>>, vector<1x8x128xf32>
    %18 = vector.shape_cast %17 : vector<1x8x128xf32> to vector<8x128xf32>
    %19 = vector.extract_strided_slice %18 {offsets = [0, 0], sizes = [1, 32], strides = [1, 1]} : vector<8x128xf32> to vector<1x32xf32>
    %20 = vector.extract_strided_slice %18 {offsets = [1, 0], sizes = [1, 32], strides = [1, 1]} : vector<8x128xf32> to vector<1x32xf32>
    %21 = vector.extract_strided_slice %18 {offsets = [2, 0], sizes = [1, 32], strides = [1, 1]} : vector<8x128xf32> to vector<1x32xf32>
    %22 = vector.extract_strided_slice %18 {offsets = [3, 0], sizes = [1, 32], strides = [1, 1]} : vector<8x128xf32> to vector<1x32xf32>
    %23 = vector.extract_strided_slice %18 {offsets = [4, 0], sizes = [1, 32], strides = [1, 1]} : vector<8x128xf32> to vector<1x32xf32>
    %24 = vector.extract_strided_slice %18 {offsets = [5, 0], sizes = [1, 32], strides = [1, 1]} : vector<8x128xf32> to vector<1x32xf32>
    %25 = vector.extract_strided_slice %18 {offsets = [6, 0], sizes = [1, 96], strides = [1, 1]} : vector<8x128xf32> to vector<1x96xf32>
    %26 = vector.extract_strided_slice %18 {offsets = [7, 0], sizes = [1, 128], strides = [1, 1]} : vector<8x128xf32> to vector<1x128xf32>
    %cst = arith.constant dense<0.000000e+00> : vector<16xf32>
    %27 = vector.multi_reduction <add>, %3, %cst [1] : vector<16x32xf32> to vector<16xf32>
    %28 = vector.shape_cast %27 : vector<16xf32> to vector<16x1xf32>
    %cst_13 = arith.constant 3.200000e+01 : f32
    %29 = vector.broadcast %cst_13 : f32 to vector<16x1xf32>
    %30 = arith.divf %28, %29 : vector<16x1xf32>
    %31 = vector.broadcast %30 : vector<16x1xf32> to vector<16x32xf32>
    %32 = arith.subf %3, %31 : vector<16x32xf32>
    %33 = arith.mulf %32, %32 : vector<16x32xf32>
    %cst_14 = arith.constant dense<0.000000e+00> : vector<16xf32>
    %34 = vector.multi_reduction <add>, %33, %cst_14 [1] : vector<16x32xf32> to vector<16xf32>
    %35 = vector.shape_cast %34 : vector<16xf32> to vector<16x1xf32>
    %cst_15 = arith.constant 3.200000e+01 : f32
    %36 = vector.broadcast %cst_15 : f32 to vector<16x1xf32>
    %37 = arith.divf %35, %36 : vector<16x1xf32>
    %cst_16 = arith.constant 9.99999974E-6 : f32
    %38 = vector.broadcast %cst_16 : f32 to vector<16x1xf32>
    %39 = arith.addf %37, %38 : vector<16x1xf32>
    %40 = math.rsqrt %39 : vector<16x1xf32>
    %41 = vector.broadcast %40 : vector<16x1xf32> to vector<16x32xf32>
    %42 = arith.mulf %32, %41 : vector<16x32xf32>
    %43 = vector.broadcast %19 : vector<1x32xf32> to vector<16x32xf32>
    %44 = arith.mulf %42, %43 : vector<16x32xf32>
    %45 = vector.broadcast %20 : vector<1x32xf32> to vector<16x32xf32>
    %46 = arith.addf %44, %45 : vector<16x32xf32>
    %47 = arith.truncf %46 : vector<16x32xf32> to vector<16x32xbf16>
    %cst_17 = arith.constant dense<0.000000e+00> : vector<16x96xf32>
    %48 = tpu.matmul %47, %6, %cst_17 {dimension_numbers = #tpu.dot_dimension_numbers<[1], [0], [0], [1], [0, 0, 1, 1], [], []>} : vector<16x32xbf16>, vector<32x96xbf16>, vector<16x96xf32> -> vector<16x96xf32>
    %49 = vector.broadcast %25 : vector<1x96xf32> to vector<16x96xf32>
    %50 = arith.addf %48, %49 : vector<16x96xf32>
    %51 = vector.extract_strided_slice %50 {offsets = [0, 0], sizes = [16, 8], strides = [1, 1]} : vector<16x96xf32> to vector<16x8xf32>
    %52 = vector.extract_strided_slice %50 {offsets = [0, 8], sizes = [16, 8], strides = [1, 1]} : vector<16x96xf32> to vector<16x8xf32>
    %53 = vector.extract_strided_slice %50 {offsets = [0, 16], sizes = [16, 8], strides = [1, 1]} : vector<16x96xf32> to vector<16x8xf32>
    %54 = vector.extract_strided_slice %50 {offsets = [0, 24], sizes = [16, 8], strides = [1, 1]} : vector<16x96xf32> to vector<16x8xf32>
    %55 = vector.shape_cast %51 : vector<16x8xf32> to vector<1x16x8xf32>
    %56 = vector.shape_cast %52 : vector<16x8xf32> to vector<1x16x8xf32>
    %57 = vector.shape_cast %53 : vector<16x8xf32> to vector<1x16x8xf32>
    %58 = vector.shape_cast %54 : vector<16x8xf32> to vector<1x16x8xf32>
    %59 = tpu.concatenate %55, %56, %57, %58 in 0 : vector<1x16x8xf32>, vector<1x16x8xf32>, vector<1x16x8xf32>, vector<1x16x8xf32> -> vector<4x16x8xf32>
    %60 = arith.truncf %59 : vector<4x16x8xf32> to vector<4x16x8xbf16>
    %61 = vector.extract_strided_slice %50 {offsets = [0, 32], sizes = [16, 8], strides = [1, 1]} : vector<16x96xf32> to vector<16x8xf32>
    %62 = vector.extract_strided_slice %50 {offsets = [0, 40], sizes = [16, 8], strides = [1, 1]} : vector<16x96xf32> to vector<16x8xf32>
    %63 = vector.extract_strided_slice %50 {offsets = [0, 48], sizes = [16, 8], strides = [1, 1]} : vector<16x96xf32> to vector<16x8xf32>
    %64 = vector.extract_strided_slice %50 {offsets = [0, 56], sizes = [16, 8], strides = [1, 1]} : vector<16x96xf32> to vector<16x8xf32>
    %65 = vector.shape_cast %61 : vector<16x8xf32> to vector<1x16x8xf32>
    %66 = vector.shape_cast %62 : vector<16x8xf32> to vector<1x16x8xf32>
    %67 = vector.shape_cast %63 : vector<16x8xf32> to vector<1x16x8xf32>
    %68 = vector.shape_cast %64 : vector<16x8xf32> to vector<1x16x8xf32>
    %69 = tpu.concatenate %65, %66, %67, %68 in 0 : vector<1x16x8xf32>, vector<1x16x8xf32>, vector<1x16x8xf32>, vector<1x16x8xf32> -> vector<4x16x8xf32>
    %70 = arith.truncf %69 : vector<4x16x8xf32> to vector<4x16x8xbf16>
    %71 = vector.extract_strided_slice %50 {offsets = [0, 64], sizes = [16, 8], strides = [1, 1]} : vector<16x96xf32> to vector<16x8xf32>
    %72 = vector.extract_strided_slice %50 {offsets = [0, 72], sizes = [16, 8], strides = [1, 1]} : vector<16x96xf32> to vector<16x8xf32>
    %73 = vector.extract_strided_slice %50 {offsets = [0, 80], sizes = [16, 8], strides = [1, 1]} : vector<16x96xf32> to vector<16x8xf32>
    %74 = vector.extract_strided_slice %50 {offsets = [0, 88], sizes = [16, 8], strides = [1, 1]} : vector<16x96xf32> to vector<16x8xf32>
    %75 = vector.shape_cast %71 : vector<16x8xf32> to vector<1x16x8xf32>
    %76 = vector.shape_cast %72 : vector<16x8xf32> to vector<1x16x8xf32>
    %77 = vector.shape_cast %73 : vector<16x8xf32> to vector<1x16x8xf32>
    %78 = vector.shape_cast %74 : vector<16x8xf32> to vector<1x16x8xf32>
    %79 = tpu.concatenate %75, %76, %77, %78 in 0 : vector<1x16x8xf32>, vector<1x16x8xf32>, vector<1x16x8xf32>, vector<1x16x8xf32> -> vector<4x16x8xf32>
    %80 = arith.truncf %79 : vector<4x16x8xf32> to vector<4x16x8xbf16>
    "tpu.trace_start"() <{level = 10 : i32, message = "htd,hsd->hts"}> : () -> ()
    %cst_18 = arith.constant dense<0.000000e+00> : vector<4x16x16xf32>
    %81 = tpu.matmul %60, %70, %cst_18 {dimension_numbers = #tpu.dot_dimension_numbers<[2], [2], [1], [1], [0, 0, 0, 1, 1, 1], [0], [0]>} : vector<4x16x8xbf16>, vector<4x16x8xbf16>, vector<4x16x16xf32> -> vector<4x16x16xf32>
    "tpu.trace_stop"() : () -> ()
    %cst_19 = arith.constant 0.353553385 : f32
    %82 = vector.broadcast %cst_19 : f32 to vector<4x16x16xf32>
    %83 = arith.mulf %81, %82 : vector<4x16x16xf32>
    %c0_20 = arith.constant 0 : index
    %c0_21 = arith.constant 0 : index
    %84 = vector.load %arg2[%c0_20, %c0_21] : memref<16x16xf32, #tpu.memory_space<vmem>>, vector<16x16xf32>
    %85 = vector.shape_cast %84 : vector<16x16xf32> to vector<1x16x16xf32>
    %86 = vector.broadcast %85 : vector<1x16x16xf32> to vector<4x16x16xf32>
    %87 = arith.addf %83, %86 : vector<4x16x16xf32>
    %cst_22 = arith.constant dense<0xFF800000> : vector<4x16xf32>
    %88 = vector.multi_reduction <maximumf>, %87, %cst_22 [2] : vector<4x16x16xf32> to vector<4x16xf32>
    %89 = vector.shape_cast %88 : vector<4x16xf32> to vector<4x16x1xf32>
    %90 = vector.broadcast %89 : vector<4x16x1xf32> to vector<4x16x16xf32>
    %91 = arith.subf %87, %90 : vector<4x16x16xf32>
    %92 = math.exp %91 : vector<4x16x16xf32>
    %cst_23 = arith.constant dense<0.000000e+00> : vector<4x16xf32>
    %93 = vector.multi_reduction <add>, %92, %cst_23 [2] : vector<4x16x16xf32> to vector<4x16xf32>
    %94 = vector.shape_cast %93 : vector<4x16xf32> to vector<4x16x1xf32>
    %95 = tpu.reciprocal %94 {approx = true} : vector<4x16x1xf32> -> vector<4x16x1xf32>
    %96 = vector.broadcast %95 : vector<4x16x1xf32> to vector<4x16x16xf32>
    %97 = arith.mulf %92, %96 : vector<4x16x16xf32>
    %98 = arith.truncf %97 : vector<4x16x16xf32> to vector<4x16x16xbf16>
    "tpu.trace_start"() <{level = 10 : i32, message = "hts,hsd->htd"}> : () -> ()
    %cst_24 = arith.constant dense<0.000000e+00> : vector<4x16x8xf32>
    %99 = tpu.matmul %98, %80, %cst_24 {dimension_numbers = #tpu.dot_dimension_numbers<[2], [1], [1], [2], [0, 0, 0, 1, 1, 2], [0], [0]>} : vector<4x16x16xbf16>, vector<4x16x8xbf16>, vector<4x16x8xf32> -> vector<4x16x8xf32>
    "tpu.trace_stop"() : () -> ()
    %100 = arith.truncf %99 : vector<4x16x8xf32> to vector<4x16x8xbf16>
    "tpu.trace_start"() <{level = 10 : i32, message = "htd,hde->hte"}> : () -> ()
    %cst_25 = arith.constant dense<0.000000e+00> : vector<4x16x32xf32>
    %101 = tpu.matmul %100, %9, %cst_25 {dimension_numbers = #tpu.dot_dimension_numbers<[2], [1], [1], [2], [0, 0, 0, 1, 1, 2], [0], [0]>} : vector<4x16x8xbf16>, vector<4x8x32xbf16>, vector<4x16x32xf32> -> vector<4x16x32xf32>
    "tpu.trace_stop"() : () -> ()
    %cst_26 = arith.constant dense<0.000000e+00> : vector<16x32xf32>
    %102 = vector.multi_reduction <add>, %101, %cst_26 [0] : vector<4x16x32xf32> to vector<16x32xf32>
    %103 = arith.addf %3, %102 : vector<16x32xf32>
    %104 = vector.broadcast %23 : vector<1x32xf32> to vector<16x32xf32>
    %105 = arith.addf %103, %104 : vector<16x32xf32>
    %cst_27 = arith.constant dense<0.000000e+00> : vector<16xf32>
    %106 = vector.multi_reduction <add>, %105, %cst_27 [1] : vector<16x32xf32> to vector<16xf32>
    %107 = vector.shape_cast %106 : vector<16xf32> to vector<16x1xf32>
    %cst_28 = arith.constant 3.200000e+01 : f32
    %108 = vector.broadcast %cst_28 : f32 to vector<16x1xf32>
    %109 = arith.divf %107, %108 : vector<16x1xf32>
    %110 = vector.broadcast %109 : vector<16x1xf32> to vector<16x32xf32>
    %111 = arith.subf %105, %110 : vector<16x32xf32>
    %112 = arith.mulf %111, %111 : vector<16x32xf32>
    %cst_29 = arith.constant dense<0.000000e+00> : vector<16xf32>
    %113 = vector.multi_reduction <add>, %112, %cst_29 [1] : vector<16x32xf32> to vector<16xf32>
    %114 = vector.shape_cast %113 : vector<16xf32> to vector<16x1xf32>
    %cst_30 = arith.constant 3.200000e+01 : f32
    %115 = vector.broadcast %cst_30 : f32 to vector<16x1xf32>
    %116 = arith.divf %114, %115 : vector<16x1xf32>
    %cst_31 = arith.constant 9.99999974E-6 : f32
    %117 = vector.broadcast %cst_31 : f32 to vector<16x1xf32>
    %118 = arith.addf %116, %117 : vector<16x1xf32>
    %119 = math.rsqrt %118 : vector<16x1xf32>
    %120 = vector.broadcast %119 : vector<16x1xf32> to vector<16x32xf32>
    %121 = arith.mulf %111, %120 : vector<16x32xf32>
    %122 = vector.broadcast %21 : vector<1x32xf32> to vector<16x32xf32>
    %123 = arith.mulf %121, %122 : vector<16x32xf32>
    %124 = vector.broadcast %22 : vector<1x32xf32> to vector<16x32xf32>
    %125 = arith.addf %123, %124 : vector<16x32xf32>
    %126 = arith.truncf %125 : vector<16x32xf32> to vector<16x32xbf16>
    %cst_32 = arith.constant dense<0.000000e+00> : vector<16x128xf32>
    %127 = tpu.matmul %126, %12, %cst_32 {dimension_numbers = #tpu.dot_dimension_numbers<[1], [0], [0], [1], [0, 0, 1, 1], [], []>} : vector<16x32xbf16>, vector<32x128xbf16>, vector<16x128xf32> -> vector<16x128xf32>
    %128 = vector.broadcast %26 : vector<1x128xf32> to vector<16x128xf32>
    %129 = arith.addf %127, %128 : vector<16x128xf32>
    %130 = arith.mulf %129, %129 : vector<16x128xf32>
    %131 = arith.mulf %129, %130 : vector<16x128xf32>
    %cst_33 = arith.constant 4.471500e-02 : f32
    %132 = vector.broadcast %cst_33 : f32 to vector<16x128xf32>
    %133 = arith.mulf %132, %131 : vector<16x128xf32>
    %134 = arith.addf %129, %133 : vector<16x128xf32>
    %cst_34 = arith.constant 0.797884583 : f32
    %135 = vector.broadcast %cst_34 : f32 to vector<16x128xf32>
    %136 = arith.mulf %135, %134 : vector<16x128xf32>
    %137 = math.tanh %136 : vector<16x128xf32>
    %cst_35 = arith.constant 1.000000e+00 : f32
    %138 = vector.broadcast %cst_35 : f32 to vector<16x128xf32>
    %139 = arith.addf %138, %137 : vector<16x128xf32>
    %cst_36 = arith.constant 5.000000e-01 : f32
    %140 = vector.broadcast %cst_36 : f32 to vector<16x128xf32>
    %141 = arith.mulf %140, %139 : vector<16x128xf32>
    %142 = arith.mulf %129, %141 : vector<16x128xf32>
    %143 = arith.truncf %142 : vector<16x128xf32> to vector<16x128xbf16>
    %cst_37 = arith.constant dense<0.000000e+00> : vector<16x32xf32>
    %144 = tpu.matmul %143, %15, %cst_37 {dimension_numbers = #tpu.dot_dimension_numbers<[1], [0], [0], [1], [0, 0, 1, 1], [], []>} : vector<16x128xbf16>, vector<128x32xbf16>, vector<16x32xf32> -> vector<16x32xf32>
    %145 = vector.broadcast %24 : vector<1x32xf32> to vector<16x32xf32>
    %146 = arith.addf %144, %145 : vector<16x32xf32>
    %147 = arith.addf %105, %146 : vector<16x32xf32>
    %c0_38 = arith.constant 0 : index
    %c0_39 = arith.constant 0 : index
    %148 = vector.load %arg11[%c0_38, %c0_39] : memref<16x32xf32, #tpu.memory_space<vmem>>, vector<16x32xf32>
    tpu.vector_store %arg11[%c0_38, %c0_39], %147 {strides = array<i32>} : memref<16x32xf32, #tpu.memory_space<vmem>>, vector<16x32xf32>,
    %c1_i32 = arith.constant 1 : i32
    %149 = arith.cmpi eq, %arg0, %c1_i32 : i32
    %150 = arith.extui %149 : i1 to i32
    %c0_i32_40 = arith.constant 0 : i32
    %151 = arith.cmpi ne, %150, %c0_i32_40 : i32
    scf.if %151 {
      %c0_41 = arith.constant 0 : index
      %c0_42 = arith.constant 0 : index
      %152 = vector.load %arg8[%c0_41, %c0_42] : memref<2x128xf32, #tpu.memory_space<vmem>>, vector<2x128xf32>
      %153 = vector.extract_strided_slice %152 {offsets = [0, 0], sizes = [1, 32], strides = [1, 1]} : vector<2x128xf32> to vector<1x32xf32>
      %154 = vector.extract_strided_slice %152 {offsets = [1, 0], sizes = [1, 32], strides = [1, 1]} : vector<2x128xf32> to vector<1x32xf32>
      %c0_43 = arith.constant 0 : index
      %c0_44 = arith.constant 0 : index
      %155 = vector.load %arg9[%c0_43, %c0_44] : memref<32x128xbf16, #tpu.memory_space<vmem>>, vector<32x128xbf16>
      %156 = vector.extract_strided_slice %147 {offsets = [7, 0], sizes = [1, 32], strides = [1, 1]} : vector<16x32xf32> to vector<1x32xf32>
      %cst_45 = arith.constant dense<0.000000e+00> : vector<1xf32>
      %157 = vector.multi_reduction <add>, %156, %cst_45 [1] : vector<1x32xf32> to vector<1xf32>
      %158 = vector.shape_cast %157 : vector<1xf32> to vector<1x1xf32>
      %cst_46 = arith.constant 3.200000e+01 : f32
      %159 = vector.broadcast %cst_46 : f32 to vector<1x1xf32>
      %160 = arith.divf %158, %159 : vector<1x1xf32>
      %161 = vector.broadcast %160 : vector<1x1xf32> to vector<1x32xf32>
      %162 = arith.subf %156, %161 : vector<1x32xf32>
      %163 = arith.mulf %162, %162 : vector<1x32xf32>
      %cst_47 = arith.constant dense<0.000000e+00> : vector<1xf32>
      %164 = vector.multi_reduction <add>, %163, %cst_47 [1] : vector<1x32xf32> to vector<1xf32>
      %165 = vector.shape_cast %164 : vector<1xf32> to vector<1x1xf32>
      %cst_48 = arith.constant 3.200000e+01 : f32
      %166 = vector.broadcast %cst_48 : f32 to vector<1x1xf32>
      %167 = arith.divf %165, %166 : vector<1x1xf32>
      %cst_49 = arith.constant 9.99999974E-6 : f32
      %168 = vector.broadcast %cst_49 : f32 to vector<1x1xf32>
      %169 = arith.addf %167, %168 : vector<1x1xf32>
      %170 = math.rsqrt %169 : vector<1x1xf32>
      %171 = vector.broadcast %170 : vector<1x1xf32> to vector<1x32xf32>
      %172 = arith.mulf %162, %171 : vector<1x32xf32>
      %173 = arith.mulf %172, %153 : vector<1x32xf32>
      %174 = arith.addf %173, %154 : vector<1x32xf32>
      %175 = arith.truncf %174 : vector<1x32xf32> to vector<1x32xbf16>
      %cst_50 = arith.constant dense<0.000000e+00> : vector<1x128xf32>
      %176 = tpu.matmul %175, %155, %cst_50 {dimension_numbers = #tpu.dot_dimension_numbers<[1], [0], [0], [1], [0, 0, 1, 1], [], []>} : vector<1x32xbf16>, vector<32x128xbf16>, vector<1x128xf32> -> vector<1x128xf32>
      %c0_51 = arith.constant 0 : index
      %c0_52 = arith.constant 0 : index
      %177 = vector.load %arg10[%c0_51, %c0_52] : memref<2x128xf32, #tpu.memory_space<vmem>>, vector<1x128xf32>
      tpu.vector_store %arg10[%c0_51, %c0_52], %176 {strides = array<i32>} : memref<2x128xf32, #tpu.memory_space<vmem>>, vector<1x128xf32>,
      %178 = vector.extract_strided_slice %147 {offsets = [15, 0], sizes = [1, 32], strides = [1, 1]} : vector<16x32xf32> to vector<1x32xf32>
      %cst_53 = arith.constant dense<0.000000e+00> : vector<1xf32>
      %179 = vector.multi_reduction <add>, %178, %cst_53 [1] : vector<1x32xf32> to vector<1xf32>
      %180 = vector.shape_cast %179 : vector<1xf32> to vector<1x1xf32>
      %cst_54 = arith.constant 3.200000e+01 : f32
      %181 = vector.broadcast %cst_54 : f32 to vector<1x1xf32>
      %182 = arith.divf %180, %181 : vector<1x1xf32>
      %183 = vector.broadcast %182 : vector<1x1xf32> to vector<1x32xf32>
      %184 = arith.subf %178, %183 : vector<1x32xf32>
      %185 = arith.mulf %184, %184 : vector<1x32xf32>
      %cst_55 = arith.constant dense<0.000000e+00> : vector<1xf32>
      %186 = vector.multi_reduction <add>, %185, %cst_55 [1] : vector<1x32xf32> to vector<1xf32>
      %187 = vector.shape_cast %186 : vector<1xf32> to vector<1x1xf32>
      %cst_56 = arith.constant 3.200000e+01 : f32
      %188 = vector.broadcast %cst_56 : f32 to vector<1x1xf32>
      %189 = arith.divf %187, %188 : vector<1x1xf32>
      %cst_57 = arith.constant 9.99999974E-6 : f32
      %190 = vector.broadcast %cst_57 : f32 to vector<1x1xf32>
      %191 = arith.addf %189, %190 : vector<1x1xf32>
      %192 = math.rsqrt %191 : vector<1x1xf32>
      %193 = vector.broadcast %192 : vector<1x1xf32> to vector<1x32xf32>
      %194 = arith.mulf %184, %193 : vector<1x32xf32>
      %195 = arith.mulf %194, %153 : vector<1x32xf32>
      %196 = arith.addf %195, %154 : vector<1x32xf32>
      %197 = arith.truncf %196 : vector<1x32xf32> to vector<1x32xbf16>
      %cst_58 = arith.constant dense<0.000000e+00> : vector<1x128xf32>
      %198 = tpu.matmul %197, %155, %cst_58 {dimension_numbers = #tpu.dot_dimension_numbers<[1], [0], [0], [1], [0, 0, 1, 1], [], []>} : vector<1x32xbf16>, vector<32x128xbf16>, vector<1x128xf32> -> vector<1x128xf32>
      %c1 = arith.constant 1 : index
      %c0_59 = arith.constant 0 : index
      %199 = vector.load %arg10[%c1, %c0_59] : memref<2x128xf32, #tpu.memory_space<vmem>>, vector<1x128xf32>
      tpu.vector_store %arg10[%c1, %c0_59], %198 {strides = array<i32>} : memref<2x128xf32, #tpu.memory_space<vmem>>, vector<1x128xf32>,
    } else {
    }
    return
  }
  func.func @transform_0(%arg0: i32) -> (i32, i32) {
    %c0_i32 = arith.constant 0 : i32
    %c0_i32_0 = arith.constant 0 : i32
    %c0_i32_1 = arith.constant 0 : i32
    return %c0_i32, %c0_i32_0 : i32, i32
  }
  func.func @transform_1(%arg0: i32) -> (i32, i32) {
    %c0_i32 = arith.constant 0 : i32
    %c0_i32_0 = arith.constant 0 : i32
    %c0_i32_1 = arith.constant 0 : i32
    return %c0_i32, %c0_i32_0 : i32, i32
  }
  func.func @transform_2(%arg0: i32) -> (i32, i32, i32) {
    %c0_i32 = arith.constant 0 : i32
    %c0_i32_0 = arith.constant 0 : i32
    %c0_i32_1 = arith.constant 0 : i32
    %c0_i32_2 = arith.constant 0 : i32
    return %c0_i32, %c0_i32_0, %c0_i32_1 : i32, i32, i32
  }
  func.func @transform_3(%arg0: i32) -> (i32, i32, i32, i32) {
    %c0_i32 = arith.constant 0 : i32
    %c0_i32_0 = arith.constant 0 : i32
    %c0_i32_1 = arith.constant 0 : i32
    %c0_i32_2 = arith.constant 0 : i32
    %c0_i32_3 = arith.constant 0 : i32
    return %c0_i32, %c0_i32_0, %c0_i32_1, %c0_i32_2 : i32, i32, i32, i32
  }
  func.func @transform_4(%arg0: i32) -> (i32, i32, i32) {
    %c0_i32 = arith.constant 0 : i32
    %c0_i32_0 = arith.constant 0 : i32
    %c0_i32_1 = arith.constant 0 : i32
    %c0_i32_2 = arith.constant 0 : i32
    return %c0_i32, %c0_i32_0, %c0_i32_1 : i32, i32, i32
  }
  func.func @transform_5(%arg0: i32) -> (i32, i32, i32) {
    %c0_i32 = arith.constant 0 : i32
    %c0_i32_0 = arith.constant 0 : i32
    %c0_i32_1 = arith.constant 0 : i32
    %c0_i32_2 = arith.constant 0 : i32
    return %c0_i32, %c0_i32_0, %c0_i32_1 : i32, i32, i32
  }
  func.func @transform_6(%arg0: i32) -> (i32, i32, i32) {
    %c0_i32 = arith.constant 0 : i32
    %c0_i32_0 = arith.constant 0 : i32
    %c0_i32_1 = arith.constant 0 : i32
    %c0_i32_2 = arith.constant 0 : i32
    return %c0_i32, %c0_i32_0, %c0_i32_1 : i32, i32, i32
  }
  func.func @transform_7(%arg0: i32) -> (i32, i32) {
    %c0_i32 = arith.constant 0 : i32
    %c0_i32_0 = arith.constant 0 : i32
    %c0_i32_1 = arith.constant 0 : i32
    return %c0_i32, %c0_i32_0 : i32, i32
  }
  func.func @transform_8(%arg0: i32) -> (i32, i32) {
    %c0_i32 = arith.constant 0 : i32
    %c0_i32_0 = arith.constant 0 : i32
    %c0_i32_1 = arith.constant 0 : i32
    return %c0_i32, %c0_i32_0 : i32, i32
  }
  func.func @transform_9(%arg0: i32) -> (i32, i32) {
    %c0_i32 = arith.constant 0 : i32
    %c0_i32_0 = arith.constant 0 : i32
    %c0_i32_1 = arith.constant 0 : i32
    return %c0_i32, %c0_i32_0 : i32, i32
  }
}

</mosaic_0001>

<bundles_post_ra>
// kernel: tpu_custom_call.1
= control target key start
LH: loop header
LB: loop body
LE: loop exit
PB: predicated region body
PF: predicated region fallthrough
CT: control target
= control target key end

     0   :  { %14 = vsyncpa [#allocation4], 0  ;;  %s2024_s30 = smov 0   ;;  %s2292_s0 = inlined_call_operand.vmem [shape: f32[16,32], index: 0, kind: input, shape index: {}]   ;;  %s2293_s1 = inlined_call_operand.vmem [shape: f32[16,16], index: 1, kind: input, shape index: {}]   ;;  %s2294_s2 = inlined_call_operand.vmem [shape: bf16[2,32,96], index: 2, kind: input, shape index: {}]   ;;  %s2295_s3 = inlined_call_operand.vmem [shape: bf16[2,4,8,32], index: 3, kind: input, shape index: {}]   ;;  %s2296_s4 = inlined_call_operand.vmem [shape: bf16[2,32,128], index: 4, kind: input, shape index: {}]   ;;  %s2297_s5 = inlined_call_operand.vmem [shape: bf16[2,128,32], index: 5, kind: input, shape index: {}]   ;;  %s2298_s6 = inlined_call_operand.vmem [shape: f32[2,8,128], index: 6, kind: input, shape index: {}]   ;;  %s2299_s7 = inlined_call_operand.vmem [shape: f32[2,128], index: 7, kind: input, shape index: {}]   ;;  %s2300_s8 = inlined_call_operand.vmem [shape: bf16[32,128], index: 8, kind: input, shape index: {}]   ;;  %s2301_s9 = inlined_call_operand.hbm [shape: f32[2,128], index: 9, kind: output, shape index: {}]  }
   0x1 LB: > { %s2030_s10 = sadd.s32 4294967295, %s1962_s30   ;;  %p1608_p0 = scmp.ge.s32.totalorder %s1962_s30, 1  ;;  %s1962_s30 = sphi %s2024_s30, %s20_s30  }
   0x2   : > { %p273_p1 = scmp.lt.s32.totalorder %s1962_s30, 3 }
   0x4   : > { %p274_p2 = pnand %p1608_p0, %p273_p1 }
   0x5   : > { %p1609_p3 = scmp.ne.s32.totalorder (!%p274_p2), %s2030_s10, 0 }
   0x6   : > { %277 = sbr.rel (%p274_p2) target bundleno = 3131 (0xc3b), region = 56 }
   0xd   : > { %303 = sbr.rel (%p1609_p3) target bundleno = 20 (0x14), region = 60  ;;  %v304_v0 = vld [vmem:[%s2292_s0] sm:$0xff] (!%p1609_p3)  ;;  %vm306_vm0 = vcmask (!%p1609_p3), 261120   ;;  %v305_v1 = vld [vmem:[%s2292_s0 + $0x8] sm:$0xff] (!%p1609_p3) }
   0xe   : > { %307 = vst.msk [vmem:[#allocation2] sm:$0xff] (!%p1609_p3), %vm306_vm0, %v304_v0  ;;  %308 = vst.msk [vmem:[#allocation2 + $0x8] sm:$0xff] (!%p1609_p3), %vm306_vm0, %v305_v1 }
  0x14 PF: > { %vm352_vm1 = vcmask 261120   ;;  %s2054_s15 = sshll.u32 %s2030_s10, 4  ;;  %v1964_v17 = vmov 0.0   ;;  %vm1965_vm2 = vmmov 0   ;;  %v380_v23 = vlaneseq  ;;  %s1616_s22 = sshll.u32 %s2030_s10, 3 }
  0x15   : > { %v2041_v2 = vld [vmem:[#allocation2] sm:$0xff]  ;;  %v2043_v3 = vld [vmem:[#allocation2 + $0x8] sm:$0xff]  ;;  %s313_s18 = scalar_lea.vmem %s2294_s2, %s2054_s15  ;;  %1701 = vmatprep.subr.bf16.mxu1 %v1964_v17  ;;  %s2065_s21 = scalar_lea.vmem %s2296_s4, %s2054_s15  ;;  %1727 = vmatprep.subr.bf16.mxu0 %v1964_v17  ;;  %vm480_vm3 = vcmask 64512   ;;  %vm696_vm4 = vcmask 130048   ;;  %vm984_vm5 = vcmask 1043456  }
  0x16   : > { %v353_v4 = vsel %vm352_vm1, %v2041_v2, 0.0  ;;  %v356_v5 = vsel %vm352_vm1, %v2043_v3, 0.0  ;;  %v1864_v16 = vld [vmem:[%s313_s18] sm:$0xff]   ;;  %v1865_v18 = vld [vmem:[%s313_s18 + $0x8] sm:$0xff]   ;;  %1705 = vmatprep.mubr.msk.bf16.mxu1 %vm1965_vm2, %v1964_v17  ;;  %1729 = vmatprep.mubr.msk.bf16.mxu0 %vm1965_vm2, %v1964_v17  ;;  %v2075_v26 = vshrl.u32 %v380_v23, 7  ;;  %s350_s25 = scalar_lea.vmem %s2298_s6, %s1616_s22  ;;  %s1966_s26 = smov 112  }
  0x17   : > { %354 = vadd.xlane.f32.xlu0 %v353_v4  ;;  %1702 = vmatpush3.bf16.msra.mxu1 %v1864_v16  ;;  %v2081_v28 = vld [vmem:[%s350_s25] sm:$0xff]  ;;  %s1967_s27 = smov 120   ;;  %s1968_s28 = smov 104  }
  0x18   : > { %1703 = vmatprep.subr.bf16.mxu1 %v1964_v17  ;;  %v382_v27 = vsub.s32 0, %v2075_v26  ;;  %v388_v32 = vsub.s32 1, %v2075_v26  ;;  %v395_v41 = vsub.s32 6, %v2075_v26  ;;  %s1969_s29 = smov 96   ;;  %s1970_s16 = smov 64  }
  0x19   : > { %s2168_s19 = scalar_lea.vmem %s2295_s3, %s2054_s15  ;;  %s1655_s15 = sshll.u32 %s2030_s10, 6 }
  0x1a   : > { %v383_v31 = vrot.slane %v2081_v28, %v382_v27  ;;  %v389_v36 = vrot.slane %v2081_v28, %v388_v32  ;;  %v396_v42 = vrot.slane %v2081_v28, %v395_v41  ;;  %s332_s22 = scalar_lea.vmem %s2297_s5, %s1655_s15  ;;  %p1643_p4 = scmp.ne.s32.totalorder %s2030_s10, 1 }
  0x1b   : > { %357 = vadd.xlane.f32.xlu0 %v356_v5  ;;  %1704 = vmatpush3.bf16.msra.mxu1 %v1865_v18  ;;  %vm1416_vm6 = vcmask (!%p1643_p4), 261127   ;;  %vm1972_vm7 = vmmov (!%p1643_p4), 0  }
  0x1c   : > { %1709 = vmatprep.subr.bf16.mxu1 %v1964_v17 }
  0xa4   : > { %v355_v6 = vpop.xlane.xlu0 %354 }
  0xa5   : > { %v360_v7 = vmul.f32 0.03125, %v355_v6 }
  0xa7   : > { %v362_v8 = vsub.f32 %v2041_v2, %v360_v7 }
  0xa8   : > { %v358_v9 = vpop.xlane.xlu0 %357 }
  0xa9   : > { %v361_v10 = vmul.f32 0.03125, %v358_v9  ;;  %v364_v11 = vmul.f32 %v362_v8, %v362_v8 }
  0xab   : > { %v363_v12 = vsub.f32 %v2043_v3, %v361_v10  ;;  %v366_v13 = vsel %vm352_vm1, %v364_v11, 0.0  ;;  %v686_v10 = vld [vmem:[%s2293_s1] sm:$0xff] }
  0xac   : > { %367 = vadd.xlane.f32.xlu1 %v366_v13 }
  0xad   : > { %v365_v14 = vmul.f32 %v363_v12, %v363_v12 }
  0xaf   : > { %v369_v15 = vsel %vm352_vm1, %v365_v14, 0.0  ;;  %v687_v14 = vld [vmem:[%s2293_s1 + $0x8] sm:$0xff] }
  0xb0   : > { %370 = vadd.xlane.f32.xlu1 %v369_v15 }
 0x139   : > { %v368_v19 = vpop.xlane.xlu1 %367 }
 0x13a   : > { %v372_v20 = vmul.f32 0.03125, %v368_v19 }
 0x13c   : > { %v374_v21 = vadd.f32 1e-05, %v372_v20 }
 0x13d   : > { %v371_v22 = vpop.xlane.xlu1 %370 }
 0x13e   : > { %1876 = vrsqrt.f32 %v374_v21  ;;  %v373_v24 = vmul.f32 0.03125, %v371_v22 }
 0x140   : > { %v375_v25 = vadd.f32 1e-05, %v373_v24 }
 0x142   : > { %1878 = vrsqrt.f32 %v375_v25 }
 0x148   : > { %v1877_v29 = vpop.eup %1876 }
 0x149   : > { %v378_v30 = vmul.f32 %v1877_v29, %v362_v8 }
 0x14b   : > { %v384_v35 = vmul.f32 %v383_v31, %v378_v30 }
 0x14c   : > { %v1879_v33 = vpop.eup %1878 }
 0x14d   : > { %v379_v34 = vmul.f32 %v1879_v33, %v363_v12  ;;  %v390_v38 = vadd.f32 %v389_v36, %v384_v35 }
 0x14f   : > { %v385_v37 = vmul.f32 %v383_v31, %v379_v34 }
 0x151   : > { %v391_v39 = vadd.f32 %v389_v36, %v385_v37 }
 0x153   : > { %v392_v40 = vpack.c.bf16 %v391_v39, %v390_v38 }
 0x155   : > { %1706 = vmatmul.mubr.msk.bf16.vlgmr.msra.gmra.mrb[0].mxu1 %vm352_vm1, %v392_v40 }
 0x156   : > { %1711 = vmatprep.mubr.msk.bf16.mxu1 %vm1965_vm2, %v1964_v17 }
 0x228   : > { %v446_v43 = vpop.f32.mrb[0].mxu1 }
 0x229   : > { %v1707_v44 = vpop.f32.mrb[1].mxu1  ;;  %v447_v46 = vadd.f32 %v446_v43, %v396_v42 }
 0x22a   : > { %v449_v45 = vpop.f32.mrb[2].mxu1 }
 0x22b   : > { %v450_v47 = vadd.f32 %v449_v45, %v396_v42  ;;  %v1708_v48 = vpop.f32.mrb[3].mxu1 }
 0x22d   : > { %v1854_v49 = vpack.i.bf16 %v450_v47, %v447_v46  ;;  %v2091_v50 = vpack.c.bf16 %v450_v47, %v447_v46 }
 0x22f   : > { %1855 = vrot.lane.b32.xlu1 %v1854_v49, %s1966_s26  ;;  %1850 = vrot.lane.b32.xlu0 %v1854_v49, %s1967_s27 }
 0x233   : > { %1860 = vrot.lane.b32.xlu1 %v1854_v49, %s1968_s28 }
 0x237   : > { %478 = vrot.lane.b32.xlu1 %v2091_v50, %s1969_s29 }
 0x2a1   : > { %v1856_v51 = vpop.permute.xlu1 %1855  ;;  %v1851_v52 = vpop.permute.xlu0 %1850 }
 0x2a2   : > { %v1858_v53 = vunpack.i.h.bf16 %v1856_v51  ;;  %v1857_v54 = vunpack.i.l.bf16 %v1856_v51  ;;  %v1853_v55 = vunpack.i.h.bf16 %v1851_v52  ;;  %v1852_v56 = vunpack.i.l.bf16 %v1851_v52 }
 0x2a4   : > { %v2094_v57 = vpack.c.bf16 %v1858_v53, %v1857_v54  ;;  %v2096_v58 = vpack.c.bf16 %v1853_v55, %v1852_v56 }
 0x2a5   : > { %v1861_v59 = vpop.permute.xlu1 %1860 }
 0x2a6   : > { %v1863_v60 = vunpack.i.h.bf16 %v1861_v59  ;;  %v1862_v61 = vunpack.i.l.bf16 %v1861_v59  ;;  %529 = vrot.lane.b32.xlu0 %v2096_v58, %s1969_s29  ;;  %579 = vrot.lane.b32.xlu1 %v2094_v57, %s1969_s29 }
 0x2a8   : > { %v2100_v62 = vpack.c.bf16 %v1863_v60, %v1862_v61 }
 0x2a9   : > { %v479_v63 = vpop.permute.xlu1 %478 }
 0x2aa   : > { %v485_v0 = vsel %vm480_vm3, %v479_v63, 0  ;;  %629 = vrot.lane.b32.xlu0 %v2100_v62, %s1969_s29 }
 0x2ab   : > { %1710 = vmatpush3.bf16.xpose.msra.mxu1 %v485_v0 }
 0x2ac   : > { %1715 = vmatprep.subr.bf16.mxu1 %v1964_v17 }
 0x2b2   : > { %1712 = vmatmul.mubr.msk.bf16.vlgmr.msra.gmra.mrb[4].mxu1 %vm480_vm3, %v2091_v50 }
 0x2b3   : > { %1717 = vmatprep.mubr.msk.bf16.mxu1 %vm1965_vm2, %v1964_v17 }
 0x318   : > { %v530_v1 = vpop.permute.xlu0 %529  ;;  %v580_v7 = vpop.permute.xlu1 %579 }
 0x319   : > { %v535_v4 = vsel %vm480_vm3, %v530_v1, 0  ;;  %v585_v8 = vsel %vm480_vm3, %v580_v7, 0 }
 0x31a   : > { %1716 = vmatpush3.bf16.xpose.msra.mxu1 %v535_v4 }
 0x31b   : > { %1721 = vmatprep.subr.bf16.mxu1 %v1964_v17 }
 0x31c   : > { %v630_v5 = vpop.permute.xlu0 %629 }
 0x31d   : > { %v635_v6 = vsel %vm480_vm3, %v630_v5, 0 }
 0x31e   : > { %1728 = vmatpush3.bf16.xpose.msra.mxu0 %v635_v6 }
 0x31f   : > { %1739 = vmatprep.subr.bf16.mxu0 %v1964_v17 }
 0x321   : > { %1718 = vmatmul.mubr.msk.bf16.vlgmr.msra.gmra.mrb[8].mxu1 %vm480_vm3, %v2096_v58 }
 0x322   : > { %1722 = vmatpush3.bf16.xpose.msra.mxu1 %v585_v8  ;;  %1723 = vmatprep.mubr.msk.bf16.mxu1 %vm1965_vm2, %v1964_v17 }
 0x323   : > { %1733 = vmatprep.subr.bf16.mxu1 %v1964_v17 }
 0x325   : > { %1730 = vmatmul.mubr.msk.bf16.vlgmr.msra.gmra.mrb[0].mxu0 %vm480_vm3, %v2100_v62 }
 0x326   : > { %1741 = vmatprep.mubr.msk.bf16.mxu0 %vm1965_vm2, %v1964_v17 }
 0x329   : > { %1724 = vmatmul.mubr.msk.bf16.vlgmr.msra.gmra.mrb[12].mxu1 %vm480_vm3, %v2094_v57 }
 0x32a   : > { %1735 = vmatprep.mubr.msk.bf16.mxu1 %vm1965_vm2, %v1964_v17 }
 0x385   : > { %v521_v9 = vpop.f32.mrb[4].mxu1 }
 0x386   : > { %v678_v11 = vmul.f32 0.35355338, %v521_v9  ;;  %v1713_v12 = vpop.f32.mrb[5].mxu1 }
 0x387   : > { %v524_v13 = vpop.f32.mrb[6].mxu1 }
 0x388   : > { %v679_v15 = vmul.f32 0.35355338, %v524_v13  ;;  %v1714_v16 = vpop.f32.mrb[7].mxu1  ;;  %v688_v18 = vadd.f32 %v686_v10, %v678_v11 }
 0x38a   : > { %v697_v19 = vsel %vm696_vm4, %v688_v18, -inf  ;;  %v689_v20 = vadd.f32 %v687_v14, %v679_v15 }
 0x38b   : > { %698 = vmax.xlane.f32.xlu1 %v697_v19 }
 0x38c   : > { %v700_v21 = vsel %vm696_vm4, %v689_v20, -inf }
 0x38d   : > { %701 = vmax.xlane.f32.xlu0 %v700_v21 }
 0x3f4   : > { %v571_v22 = vpop.f32.mrb[8].mxu1 }
 0x3f5   : > { %v680_v23 = vmul.f32 0.35355338, %v571_v22  ;;  %v1719_v24 = vpop.f32.mrb[9].mxu1 }
 0x3f6   : > { %v574_v25 = vpop.f32.mrb[10].mxu1 }
 0x3f7   : > { %v681_v27 = vmul.f32 0.35355338, %v574_v25  ;;  %v1720_v29 = vpop.f32.mrb[11].mxu1  ;;  %v690_v30 = vadd.f32 %v686_v10, %v680_v23 }
 0x3f8   : > { %v671_v31 = vpop.f32.mrb[0].mxu0 }
 0x3f9   : > { %v1731_v32 = vpop.f32.mrb[1].mxu0  ;;  %v703_v33 = vsel %vm696_vm4, %v690_v30, -inf  ;;  %v691_v34 = vadd.f32 %v687_v14, %v681_v27  ;;  %v684_v38 = vmul.f32 0.35355338, %v671_v31 }
 0x3fa   : > { %v674_v35 = vpop.f32.mrb[2].mxu0  ;;  %704 = vmax.xlane.f32.xlu0 %v703_v33 }
 0x3fb   : > { %v1732_v36 = vpop.f32.mrb[3].mxu0  ;;  %v706_v41 = vsel %vm696_vm4, %v691_v34, -inf  ;;  %v685_v43 = vmul.f32 0.35355338, %v674_v35  ;;  %v694_v49 = vadd.f32 %v686_v10, %v684_v38 }
 0x3fc   : > { %v621_v37 = vpop.f32.mrb[12].mxu1 }
 0x3fd   : > { %v682_v39 = vmul.f32 0.35355338, %v621_v37  ;;  %v1725_v40 = vpop.f32.mrb[13].mxu1  ;;  %v695_v52 = vadd.f32 %v687_v14, %v685_v43  ;;  %v715_v53 = vsel %vm696_vm4, %v694_v49, -inf }
 0x3fe   : > { %707 = vmax.xlane.f32.xlu0 %v706_v41  ;;  %v624_v42 = vpop.f32.mrb[14].mxu1 }
 0x3ff   : > { %v683_v44 = vmul.f32 0.35355338, %v624_v42  ;;  %v1726_v45 = vpop.f32.mrb[15].mxu1  ;;  %v692_v46 = vadd.f32 %v686_v10, %v682_v39  ;;  %v718_v54 = vsel %vm696_vm4, %v695_v52, -inf }
 0x401   : > { %v709_v47 = vsel %vm696_vm4, %v692_v46, -inf  ;;  %v693_v48 = vadd.f32 %v687_v14, %v683_v44 }
 0x402   : > { %710 = vmax.xlane.f32.xlu1 %v709_v47 }
 0x403   : > { %v712_v51 = vsel %vm696_vm4, %v693_v48, -inf }
 0x404   : > { %713 = vmax.xlane.f32.xlu0 %v712_v51 }
 0x406   : > { %716 = vmax.xlane.f32.xlu1 %v715_v53 }
 0x408   : > { %719 = vmax.xlane.f32.xlu0 %v718_v54 }
 0x417   : > { %789 = vrot.lane.b32.xlu1 %v2091_v50, %s1970_s16 }
 0x418   : > { %v699_v60 = vpop.xlane.xlu1 %698 }
 0x419   : > { %v721_v61 = vsub.f32 %v688_v18, %v699_v60 }
 0x41a   : > { %v702_v55 = vpop.xlane.xlu0 %701 }
 0x41b   : > { %v722_v56 = vsub.f32 %v689_v20, %v702_v55  ;;  %v729_v0 = vmul.f32 1.442695, %v721_v61 }
 0x41d   : > { %v731_v59 = vmul.f32 1.442695, %v722_v56 }
 0x41f   : > { %1880 = vpow2.f32 %v731_v59 }
 0x420   : > { %1882 = vpow2.f32 %v729_v0 }
 0x429   : > { %v1881_v63 = vpop.eup %1880 }
 0x42a   : > { %v748_v1 = vsel %vm696_vm4, %v1881_v63, 0.0  ;;  %v1883_v4 = vpop.eup %1882 }
 0x42b   : > { %749 = vadd.xlane.f32.xlu0 %v748_v1  ;;  %v745_v5 = vsel %vm696_vm4, %v1883_v4, 0.0 }
 0x43b   : > { %746 = vadd.xlane.f32.xlu1 %v745_v5 }
 0x487   : > { %v705_v6 = vpop.xlane.xlu0 %704 }
 0x488   : > { %v723_v7 = vsub.f32 %v690_v30, %v705_v6 }
 0x48a   : > { %v733_v8 = vmul.f32 1.442695, %v723_v7 }
 0x48b   : > { %v708_v50 = vpop.xlane.xlu0 %707 }
 0x48c   : > { %1884 = vpow2.f32 %v733_v8  ;;  %v724_v9 = vsub.f32 %v691_v34, %v708_v50 }
 0x48e   : > { %v735_v10 = vmul.f32 1.442695, %v724_v9 }
 0x48f   : > { %v711_v11 = vpop.xlane.xlu1 %710 }
 0x490   : > { %1886 = vpow2.f32 %v735_v10  ;;  %v725_v12 = vsub.f32 %v692_v46, %v711_v11  ;;  %v321_v10 = vld [vmem:[%s2168_s19 + $0x4] sm:$0xf] }
 0x491   : > { %v714_v13 = vpop.xlane.xlu0 %713  ;;  %v1033_v11 = vsel %vm984_vm5, %v321_v10, 0 }
 0x492   : > { %v726_v15 = vsub.f32 %v693_v48, %v714_v13  ;;  %v737_v18 = vmul.f32 1.442695, %v725_v12  ;;  %v322_v13 = vld [vmem:[%s2168_s19 + $0x8] sm:$0xf] }
 0x493   : > { %v717_v14 = vpop.xlane.xlu1 %716 }
 0x494   : > { %v727_v16 = vsub.f32 %v694_v49, %v717_v14  ;;  %v739_v25 = vmul.f32 1.442695, %v726_v15 }
 0x495   : > { %v720_v19 = vpop.xlane.xlu0 %719 }
 0x496   : > { %v1885_v20 = vpop.eup %1884  ;;  %v741_v21 = vmul.f32 1.442695, %v727_v16  ;;  %v728_v22 = vsub.f32 %v695_v52, %v720_v19  ;;  %v1080_v19 = vsel %vm984_vm5, %v322_v13, 0 }
 0x497   : > { %v790_v23 = vpop.permute.xlu1 %789  ;;  %v751_v24 = vsel %vm696_vm4, %v1885_v20, 0.0 }
 0x498   : > { %1888 = vpow2.f32 %v741_v21  ;;  %v743_v27 = vmul.f32 1.442695, %v728_v22  ;;  %752 = vadd.xlane.f32.xlu1 %v751_v24  ;;  %1734 = vmatpush3.bf16.msra.mxu1 %v790_v23  ;;  %v323_v21 = vld [vmem:[%s2168_s19 + $0xc] sm:$0xf] }
 0x499   : > { %1890 = vpow2.f32 %v737_v18  ;;  %1745 = vmatprep.subr.bf16.mxu1 %v1964_v17 }
 0x49a   : > { %v1887_v29 = vpop.eup %1886  ;;  %1892 = vpow2.f32 %v743_v27  ;;  %v1127_v27 = vsel %vm984_vm5, %v323_v21, 0 }
 0x49b   : > { %v754_v30 = vsel %vm696_vm4, %v1887_v29, 0.0  ;;  %1894 = vpow2.f32 %v739_v25 }
 0x49c   : > { %755 = vadd.xlane.f32.xlu0 %v754_v30 }
 0x4a2   : > { %v1889_v31 = vpop.eup %1888 }
 0x4a3   : > { %v1891_v32 = vpop.eup %1890  ;;  %v763_v33 = vsel %vm696_vm4, %v1889_v31, 0.0 }
 0x4a4   : > { %v1893_v34 = vpop.eup %1892  ;;  %764 = vadd.xlane.f32.xlu1 %v763_v33  ;;  %v757_v37 = vsel %vm696_vm4, %v1891_v32, 0.0 }
 0x4a5   : > { %v766_v35 = vsel %vm696_vm4, %v1893_v34, 0.0  ;;  %v1895_v36 = vpop.eup %1894 }
 0x4a6   : > { %767 = vadd.xlane.f32.xlu0 %v766_v35  ;;  %v760_v38 = vsel %vm696_vm4, %v1895_v36, 0.0 }
 0x4a8   : > { %758 = vadd.xlane.f32.xlu1 %v757_v37 }
 0x4aa   : > { %761 = vadd.xlane.f32.xlu0 %v760_v38 }
 0x4b8   : > { %v750_v39 = vpop.xlane.xlu0 %749 }
 0x4b9   : > { %883 = vrot.lane.b32.xlu1 %v2094_v57, %s1970_s16  ;;  %1896 = vrcp.f32 %v750_v39 }
 0x4bd   : > { %930 = vrot.lane.b32.xlu1 %v2100_v62, %s1970_s16 }
 0x4c0   : > { %836 = vrot.lane.b32.xlu0 %v2096_v58, %s1970_s16 }
 0x4c3   : > { %v1897_v41 = vpop.eup %1896 }
 0x4c4   : > { %v778_v43 = vmul.f32 %v1897_v41, %v1881_v63 }
 0x4c8   : > { %v747_v40 = vpop.xlane.xlu1 %746 }
 0x4c9   : > { %1898 = vrcp.f32 %v747_v40 }
 0x4d3   : > { %v1899_v42 = vpop.eup %1898 }
 0x4d4   : > { %v777_v44 = vmul.f32 %v1899_v42, %v1883_v4  ;;  %v320_v4 = vld [vmem:[%s2168_s19] sm:$0xf] }
 0x4d5   : > { %v986_v9 = vsel %vm984_vm5, %v320_v4, 0 }
 0x4d6   : > { %v785_v45 = vpack.c.bf16 %v778_v43, %v777_v44 }
 0x4d8   : > { %1736 = vmatmul.mubr.msk.bf16.vlgmr.msra.gmra.mrb[16].mxu1 %vm696_vm4, %v785_v45 }
 0x4d9   : > { %1747 = vmatprep.mubr.msk.bf16.mxu1 %vm1965_vm2, %v1964_v17 }
 0x525   : > { %v753_v46 = vpop.xlane.xlu1 %752 }
 0x529   : > { %v756_v57 = vpop.xlane.xlu0 %755 }
 0x52a   : > { %1900 = vrcp.f32 %v756_v57 }
 0x52b   : > { %1902 = vrcp.f32 %v753_v46 }
 0x531   : > { %v765_v62 = vpop.xlane.xlu1 %764 }
 0x533   : > { %v768_v58 = vpop.xlane.xlu0 %767 }
 0x534   : > { %1904 = vrcp.f32 %v768_v58  ;;  %v1901_v48 = vpop.eup %1900 }
 0x535   : > { %1906 = vrcp.f32 %v765_v62  ;;  %v759_v47 = vpop.xlane.xlu1 %758  ;;  %v1903_v51 = vpop.eup %1902  ;;  %v780_v52 = vmul.f32 %v1901_v48, %v1887_v29 }
 0x536   : > { %1908 = vrcp.f32 %v759_v47  ;;  %v779_v54 = vmul.f32 %v1903_v51, %v1885_v20 }
 0x537   : > { %v762_v49 = vpop.xlane.xlu0 %761 }
 0x538   : > { %1910 = vrcp.f32 %v762_v49  ;;  %v786_v56 = vpack.c.bf16 %v780_v52, %v779_v54 }
 0x539   : > { %v884_v53 = vpop.permute.xlu1 %883 }
 0x53a   : > { %1746 = vmatpush3.bf16.msra.mxu1 %v884_v53  ;;  %v1188_v53 = vsub.s32 4, %v2075_v26 }
 0x53b   : > { %v837_v55 = vpop.permute.xlu0 %836  ;;  %1757 = vmatprep.subr.bf16.mxu1 %v1964_v17 }
 0x53c   : > { %1740 = vmatpush3.bf16.msra.mxu0 %v837_v55 }
 0x53d   : > { %1751 = vmatprep.subr.bf16.mxu0 %v1964_v17  ;;  %v931_v61 = vpop.permute.xlu1 %930 }
 0x53e   : > { %v1905_v59 = vpop.eup %1904 }
 0x53f   : > { %v1907_v60 = vpop.eup %1906  ;;  %1742 = vmatmul.mubr.msk.bf16.vlgmr.msra.gmra.mrb[4].mxu0 %vm696_vm4, %v786_v56  ;;  %v784_v0 = vmul.f32 %v1905_v59, %v1893_v34 }
 0x540   : > { %v1909_v63 = vpop.eup %1908  ;;  %1752 = vmatpush3.bf16.msra.mxu0 %v931_v61  ;;  %1753 = vmatprep.mubr.msk.bf16.mxu0 %vm1965_vm2, %v1964_v17  ;;  %v783_v5 = vmul.f32 %v1907_v60, %v1889_v31 }
 0x541   : > { %1763 = vmatprep.subr.bf16.mxu0 %v1964_v17  ;;  %v781_v6 = vmul.f32 %v1909_v63, %v1891_v32 }
 0x542   : > { %v1911_v1 = vpop.eup %1910  ;;  %v788_v50 = vpack.c.bf16 %v784_v0, %v783_v5 }
 0x543   : > { %v782_v7 = vmul.f32 %v1911_v1, %v1895_v36 }
 0x545   : > { %v787_v8 = vpack.c.bf16 %v782_v7, %v781_v6  ;;  %v1189_v7 = vrot.slane %v2081_v28, %v1188_v53  ;;  %v1233_v53 = vsub.s32 7, %v2075_v26 }
 0x547   : > { %1748 = vmatmul.mubr.msk.bf16.vlgmr.msra.gmra.mrb[20].mxu1 %vm696_vm4, %v787_v8  ;;  %1754 = vmatmul.mubr.msk.bf16.vlgmr.msra.gmra.mrb[8].mxu0 %vm696_vm4, %v788_v50 }
 0x548   : > { %1758 = vmatpush3.bf16.msra.mxu1 %v986_v9  ;;  %1759 = vmatprep.mubr.msk.bf16.mxu1 %vm1965_vm2, %v1964_v17 }
 0x549   : > { %1765 = vmatprep.mubr.msk.bf16.mxu0 %vm1965_vm2, %v1964_v17  ;;  %1769 = vmatprep.subr.bf16.mxu1 %v1964_v17 }
 0x54a   : > { %1764 = vmatpush3.bf16.msra.mxu0 %v1033_v11 }
 0x54b   : > { %1775 = vmatprep.subr.bf16.mxu0 %v1964_v17 }
 0x5ab   : > { %v829_v12 = vpop.f32.mrb[16].mxu1 }
 0x5ac   : > { %v1737_v14 = vpop.f32.mrb[17].mxu1 }
 0x5ad   : > { %v832_v15 = vpop.f32.mrb[18].mxu1 }
 0x5ae   : > { %v977_v16 = vpack.c.bf16 %v832_v15, %v829_v12  ;;  %v1738_v18 = vpop.f32.mrb[19].mxu1 }
 0x5b0   : > { %1760 = vmatmul.mubr.msk.bf16.vlgmr.msra.gmra.mrb[24].mxu1 %vm480_vm3, %v977_v16 }
 0x5b1   : > { %1770 = vmatpush3.bf16.msra.mxu1 %v1080_v19  ;;  %1771 = vmatprep.mubr.msk.bf16.mxu1 %vm1965_vm2, %v1964_v17 }
 0x5b2   : > { %1781 = vmatprep.subr.bf16.mxu1 %v1964_v17 }
 0x612   : > { %v876_v20 = vpop.f32.mrb[4].mxu0 }
 0x613   : > { %v1743_v22 = vpop.f32.mrb[5].mxu0 }
 0x614   : > { %v879_v23 = vpop.f32.mrb[6].mxu0 }
 0x615   : > { %v978_v24 = vpack.c.bf16 %v879_v23, %v876_v20  ;;  %v1744_v25 = vpop.f32.mrb[7].mxu0 }
 0x616   : > { %v1867_v25 = vld [vmem:[%s2065_s21 + $0x8] sm:$0xff]  }
 0x617   : > { %1766 = vmatmul.mubr.msk.bf16.vlgmr.msra.gmra.mrb[12].mxu0 %vm480_vm3, %v978_v24  ;;  %v1866_v24 = vld [vmem:[%s2065_s21] sm:$0xff]  }
 0x618   : > { %1776 = vmatpush3.bf16.msra.mxu0 %v1127_v27  ;;  %1777 = vmatprep.mubr.msk.bf16.mxu0 %vm1965_vm2, %v1964_v17 }
 0x619   : > { %1789 = vmatprep.subr.bf16.mxu0 %v1964_v17 }
 0x61a   : > { %v923_v29 = vpop.f32.mrb[20].mxu1  ;;  %v970_v30 = vpop.f32.mrb[8].mxu0 }
 0x61b   : > { %v1749_v31 = vpop.f32.mrb[21].mxu1  ;;  %v1755_v32 = vpop.f32.mrb[9].mxu0 }
 0x61c   : > { %v926_v33 = vpop.f32.mrb[22].mxu1  ;;  %v973_v34 = vpop.f32.mrb[10].mxu0 }
 0x61d   : > { %v979_v35 = vpack.c.bf16 %v926_v33, %v923_v29  ;;  %v980_v36 = vpack.c.bf16 %v973_v34, %v970_v30  ;;  %v1750_v37 = vpop.f32.mrb[23].mxu1  ;;  %v1756_v38 = vpop.f32.mrb[11].mxu0  ;;  %v1220_v34 = vsub.s32 2, %v2075_v26 }
 0x61e   : > { %v1226_v38 = vsub.s32 3, %v2075_v26 }
 0x61f   : > { %1772 = vmatmul.mubr.msk.bf16.vlgmr.msra.gmra.mrb[28].mxu1 %vm480_vm3, %v979_v35  ;;  %1778 = vmatmul.mubr.msk.bf16.vlgmr.msra.gmra.mrb[16].mxu0 %vm480_vm3, %v980_v36  ;;  %v1221_v36 = vrot.slane %v2081_v28, %v1220_v34 }
 0x620   : > { %1785 = vmatprep.mubr.msk.bf16.mxu1 %vm1965_vm2, %v1964_v17  ;;  %1805 = vmatprep.mubr.msk.bf16.mxu0 %vm1965_vm2, %v1964_v17 }
 0x621   : > { %1782 = vmatpush3.bf16.msra.mxu1 %v1866_v24 }
 0x622   : > { %1783 = vmatprep.subr.bf16.mxu1 %v1964_v17 }
 0x625   : > { %1784 = vmatpush3.bf16.msra.mxu1 %v1867_v25 }
 0x683   : > { %v1022_v39 = vpop.f32.mrb[24].mxu1 }
 0x684   : > { %v1761_v40 = vpop.f32.mrb[25].mxu1  ;;  %v1170_v44 = vsel %vm352_vm1, %v1022_v39, 0.0 }
 0x685   : > { %v1025_v41 = vpop.f32.mrb[26].mxu1 }
 0x686   : > { %v1762_v42 = vpop.f32.mrb[27].mxu1  ;;  %v1177_v58 = vsel %vm352_vm1, %v1025_v41, 0.0 }
 0x687   : > { %v1227_v42 = vrot.slane %v2081_v28, %v1226_v38 }
 0x6ea   : > { %v1069_v43 = vpop.f32.mrb[12].mxu0 }
 0x6eb   : > { %v1171_v45 = vsel %vm352_vm1, %v1069_v43, 0.0  ;;  %v1767_v57 = vpop.f32.mrb[13].mxu0 }
 0x6ec   : > { %v1172_v46 = vadd.f32 %v1171_v45, %v1170_v44  ;;  %v1072_v62 = vpop.f32.mrb[14].mxu0 }
 0x6ed   : > { %v1178_v47 = vsel %vm352_vm1, %v1072_v62, 0.0  ;;  %v1768_v48 = vpop.f32.mrb[15].mxu0  ;;  %v1869_v62 = vld [vmem:[%s332_s22 + $0x8] sm:$0xff]  }
 0x6ee   : > { %v1179_v49 = vadd.f32 %v1178_v47, %v1177_v58  ;;  %v1870_v58 = vld [vmem:[%s332_s22 + $0x10] sm:$0xff]   ;;  %v1871_v47 = vld [vmem:[%s332_s22 + $0x18] sm:$0xff]   ;;  %v1872_v48 = vld [vmem:[%s332_s22 + $0x20] sm:$0xff]  }
 0x6f2   : > { %v1116_v51 = vpop.f32.mrb[28].mxu1  ;;  %v1163_v52 = vpop.f32.mrb[16].mxu0 }
 0x6f3   : > { %v1173_v54 = vsel %vm352_vm1, %v1116_v51, 0.0  ;;  %v1773_v55 = vpop.f32.mrb[29].mxu1  ;;  %v1779_v56 = vpop.f32.mrb[17].mxu0  ;;  %v1175_v63 = vsel %vm352_vm1, %v1163_v52, 0.0  ;;  %v1874_v51 = vld [vmem:[%s332_s22 + $0x30] sm:$0xff]   ;;  %v1875_v52 = vld [vmem:[%s332_s22 + $0x38] sm:$0xff]  }
 0x6f4   : > { %v1174_v59 = vadd.f32 %v1173_v54, %v1172_v46  ;;  %v1119_v60 = vpop.f32.mrb[30].mxu1  ;;  %v1166_v61 = vpop.f32.mrb[18].mxu0  ;;  %v1868_v46 = vld [vmem:[%s332_s22] sm:$0xff]   ;;  %v1234_v54 = vrot.slane %v2081_v28, %v1233_v53 }
 0x6f5   : > { %v1180_v0 = vsel %vm352_vm1, %v1119_v60, 0.0  ;;  %v1774_v1 = vpop.f32.mrb[31].mxu1  ;;  %v1780_v4 = vpop.f32.mrb[19].mxu0  ;;  %v1182_v8 = vsel %vm352_vm1, %v1166_v61, 0.0  ;;  %1790 = vmatpush3.bf16.msra.mxu0 %v1868_v46 }
 0x6f6   : > { %v1176_v5 = vadd.f32 %v1175_v63, %v1174_v59  ;;  %v1181_v6 = vadd.f32 %v1180_v0, %v1179_v49  ;;  %1791 = vmatprep.subr.bf16.mxu0 %v1964_v17  ;;  %v1873_v49 = vld [vmem:[%s332_s22 + $0x28] sm:$0xff]  }
 0x6f8   : > { %v1184_v50 = vadd.f32 %v1176_v5, %v2041_v2  ;;  %v1183_v9 = vadd.f32 %v1182_v8, %v1181_v6 }
 0x6f9   : > { %1792 = vmatpush3.bf16.msra.mxu0 %v1869_v62 }
 0x6fa   : > { %v1185_v10 = vadd.f32 %v1183_v9, %v2043_v3  ;;  %v2215_v11 = vadd.f32 %v1189_v7, %v1184_v50  ;;  %1793 = vmatprep.subr.bf16.mxu0 %v1964_v17 }
 0x6fc   : > { %v1192_v12 = vsel %vm352_vm1, %v2215_v11, 0.0  ;;  %v2219_v13 = vadd.f32 %v1189_v7, %v1185_v10 }
 0x6fd   : > { %1193 = vadd.xlane.f32.xlu1 %v1192_v12  ;;  %1794 = vmatpush3.bf16.msra.mxu0 %v1870_v58  ;;  %v1411_v58 = vld [vmem:[%s2299_s7] sm:$0x3] (!%p1643_p4) }
 0x6fe   : > { %v1195_v14 = vsel %vm352_vm1, %v2219_v13, 0.0  ;;  %1795 = vmatprep.subr.bf16.mxu0 %v1964_v17 }
 0x6ff   : > { %1196 = vadd.xlane.f32.xlu0 %v1195_v14 }
 0x701   : > { %1796 = vmatpush3.bf16.msra.mxu0 %v1871_v47  ;;  %v1431_v47 = vrot.slane (!%p1643_p4), %v1411_v58, 1 }
 0x702   : > { %1797 = vmatprep.subr.bf16.mxu0 %v1964_v17 }
 0x705   : > { %1798 = vmatpush3.bf16.msra.mxu0 %v1872_v48 }
 0x706   : > { %1799 = vmatprep.subr.bf16.mxu0 %v1964_v17 }
 0x709   : > { %1800 = vmatpush3.bf16.msra.mxu0 %v1873_v49 }
 0x70a   : > { %1801 = vmatprep.subr.bf16.mxu0 %v1964_v17 }
 0x70d   : > { %1802 = vmatpush3.bf16.msra.mxu0 %v1874_v51  ;;  %v1434_v51 = vrot.slane (!%p1643_p4), %v1411_v58, 2 }
 0x70e   : > { %1803 = vmatprep.subr.bf16.mxu0 %v1964_v17 }
 0x711   : > { %1804 = vmatpush3.bf16.msra.mxu0 %v1875_v52 }
 0x78a   : > { %v1194_v15 = vpop.xlane.xlu1 %1193 }
 0x78b   : > { %v1198_v16 = vmul.f32 0.03125, %v1194_v15 }
 0x78c   : > { %v1197_v2 = vpop.xlane.xlu0 %1196 }
 0x78d   : > { %v1200_v18 = vsub.f32 %v2215_v11, %v1198_v16  ;;  %v1199_v3 = vmul.f32 0.03125, %v1197_v2 }
 0x78f   : > { %v1201_v19 = vsub.f32 %v2219_v13, %v1199_v3  ;;  %v1202_v20 = vmul.f32 %v1200_v18, %v1200_v18 }
 0x791   : > { %v1204_v21 = vsel %vm352_vm1, %v1202_v20, 0.0  ;;  %v1203_v22 = vmul.f32 %v1201_v19, %v1201_v19  ;;  %v1312_v20 = vsub.s32 5, %v2075_v26 }
 0x792   : > { %1205 = vadd.xlane.f32.xlu0 %v1204_v21 }
 0x793   : > { %v1207_v23 = vsel %vm352_vm1, %v1203_v22, 0.0  ;;  %v1313_v21 = vrot.slane %v2081_v28, %v1312_v20 }
 0x796   : > { %1208 = vadd.xlane.f32.xlu0 %v1207_v23 }
 0x81f   : > { %v1206_v27 = vpop.xlane.xlu0 %1205 }
 0x820   : > { %v1210_v29 = vmul.f32 0.03125, %v1206_v27 }
 0x822   : > { %v1212_v30 = vadd.f32 1e-05, %v1210_v29 }
 0x823   : > { %v1209_v31 = vpop.xlane.xlu0 %1208 }
 0x824   : > { %1912 = vrsqrt.f32 %v1212_v30  ;;  %v1211_v32 = vmul.f32 0.03125, %v1209_v31 }
 0x826   : > { %v1213_v33 = vadd.f32 1e-05, %v1211_v32 }
 0x828   : > { %1914 = vrsqrt.f32 %v1213_v33 }
 0x82e   : > { %v1913_v35 = vpop.eup %1912 }
 0x82f   : > { %v1216_v37 = vmul.f32 %v1913_v35, %v1200_v18 }
 0x831   : > { %v1222_v40 = vmul.f32 %v1221_v36, %v1216_v37 }
 0x832   : > { %v1915_v39 = vpop.eup %1914 }
 0x833   : > { %v1217_v41 = vmul.f32 %v1915_v39, %v1201_v19  ;;  %v1228_v44 = vadd.f32 %v1227_v42, %v1222_v40  ;;  %v1920_v40 = vld [vmem:[%s2300_s8] sm:$0xff] (!%p1643_p4)  }
 0x835   : > { %v1223_v43 = vmul.f32 %v1221_v36, %v1217_v41  ;;  %v1971_v41 = vmov (!%p1643_p4), 0.0  }
 0x836   : > { %1809 = vmatprep.subr.bf16.mxu0 (!%p1643_p4), %v1971_v41  ;;  %1817 = vmatprep.subr.bf16.mxu1 (!%p1643_p4), %v1971_v41 }
 0x837   : > { %v1229_v45 = vadd.f32 %v1227_v42, %v1223_v43  ;;  %v1921_v42 = vld [vmem:[%s2300_s8 + $0x8] sm:$0xff] (!%p1643_p4)  }
 0x839   : > { %v1230_v57 = vpack.c.bf16 %v1229_v45, %v1228_v44 }
 0x83b   : > { %1786 = vmatmul.mubr.msk.bf16.vlgmr.msra.gmra.mrb[32].mxu1 %vm352_vm1, %v1230_v57 }
 0x83c   : > { %1818 = vmatpush3.bf16.msra.mxu1 (!%p1643_p4), %v1920_v40  ;;  %1821 = vmatprep.mubr.msk.bf16.mxu1 (!%p1643_p4), %vm1972_vm7, %v1971_v41 }
 0x83d   : > { %1819 = vmatprep.subr.bf16.mxu1 (!%p1643_p4), %v1971_v41 }
 0x840   : > { %1820 = vmatpush3.bf16.msra.mxu1 (!%p1643_p4), %v1921_v42 }
 0x90e   : > { %v1284_v55 = vpop.f32.mrb[32].mxu1 }
 0x90f   : > { %v1285_v56 = vadd.f32 %v1284_v55, %v1234_v54  ;;  %v1787_v59 = vpop.f32.mrb[33].mxu1 }
 0x910   : > { %v1287_v60 = vpop.f32.mrb[34].mxu1 }
 0x911   : > { %v1291_v61 = vmul.f32 %v1285_v56, %v1285_v56  ;;  %v1288_v63 = vadd.f32 %v1287_v60, %v1234_v54  ;;  %v1788_v0 = vpop.f32.mrb[35].mxu1 }
 0x913   : > { %v1293_v1 = vmul.f32 %v1291_v61, %v1285_v56  ;;  %v1292_v4 = vmul.f32 %v1288_v63, %v1288_v63 }
 0x915   : > { %v1295_v5 = vmul.f32 0.044715, %v1293_v1  ;;  %v1294_v6 = vmul.f32 %v1292_v4, %v1288_v63 }
 0x917   : > { %v1297_v7 = vadd.f32 %v1295_v5, %v1285_v56  ;;  %v1296_v8 = vmul.f32 0.044715, %v1294_v6 }
 0x919   : > { %v1299_v17 = vmul.f32 0.7978846, %v1297_v7  ;;  %v1298_v50 = vadd.f32 %v1296_v8, %v1288_v63 }
 0x91b   : > { %1916 = vtanh.f32 %v1299_v17  ;;  %v1300_v9 = vmul.f32 0.7978846, %v1298_v50 }
 0x91d   : > { %1918 = vtanh.f32 %v1300_v9 }
 0x925   : > { %v1917_v10 = vpop.eup %1916 }
 0x926   : > { %v1303_v12 = vadd.f32 1.0, %v1917_v10 }
 0x927   : > { %v1919_v14 = vpop.eup %1918 }
 0x928   : > { %v1305_v15 = vmul.f32 0.5, %v1303_v12  ;;  %v1304_v16 = vadd.f32 1.0, %v1919_v14 }
 0x92a   : > { %v1306_v2 = vmul.f32 0.5, %v1304_v16  ;;  %v1307_v18 = vmul.f32 %v1305_v15, %v1285_v56 }
 0x92c   : > { %v1308_v3 = vmul.f32 %v1306_v2, %v1288_v63 }
 0x92e   : > { %v1309_v19 = vpack.c.bf16 %v1308_v3, %v1307_v18 }
 0x930   : > { %1806 = vmatmul.mubr.bf16.vlgmr.msra.gmra.mrb[20].mxu0 %v1309_v19 }
 0x931   : > { %1810 = vmatpush3.bf16.msra.mxu0 (!%p1643_p4), %v1920_v40  ;;  %1813 = vmatprep.mubr.msk.bf16.mxu0 (!%p1643_p4), %vm1972_vm7, %v1971_v41 }
 0x932   : > { %1811 = vmatprep.subr.bf16.mxu0 (!%p1643_p4), %v1971_v41 }
 0x935   : > { %1812 = vmatpush3.bf16.msra.mxu0 (!%p1643_p4), %v1921_v42 }
 0xa03   : > { %v1396_v22 = vpop.f32.mrb[20].mxu0 }
 0xa04   : > { %v1397_v23 = vadd.f32 %v1396_v22, %v1313_v21  ;;  %v1807_v24 = vpop.f32.mrb[21].mxu0  ;;  %1410 = sbr.rel (%p1643_p4) target bundleno = 3106 (0xc22), region = 64 }
 0xa05   : > { %v1399_v25 = vpop.f32.mrb[22].mxu0 }
 0xa06   : > { %v1403_v27 = vadd.f32 %v1397_v23, %v2215_v11  ;;  %v1400_v29 = vadd.f32 %v1399_v25, %v1313_v21  ;;  %v1808_v30 = vpop.f32.mrb[23].mxu0 }
 0xa08   : > { %1405 = vst.msk [vmem:[#allocation2] sm:$0xff] %vm352_vm1, %v1403_v27  ;;  %v1404_v31 = vadd.f32 %v1400_v29, %v2219_v13  ;;  %v1417_v26 = vsel (!%p1643_p4), %vm1416_vm6, %v1403_v27, 0.0 }
 0xa09   : > { %1418 = vadd.xlane.f32.xlu0 (!%p1643_p4), %v1417_v26 }
 0xa0a   : > { %1406 = vst.msk [vmem:[#allocation2 + $0x8] sm:$0xff] %vm352_vm1, %v1404_v31  ;;  %v1498_v28 = vsel (!%p1643_p4), %vm1416_vm6, %v1404_v31, 0.0 }
 0xa0d   : > { %1499 = vadd.xlane.f32.xlu0 %v1498_v28 }
 0xa96   : > { %v1419_v32 = vpop.xlane.xlu0 %1418 }
 0xa97   : > { %v1420_v33 = vmul.f32 0.03125, %v1419_v32 }
 0xa99   : > { %v1421_v34 = vsub.f32 %v1403_v27, %v1420_v33 }
 0xa9a   : > { %v1500_v11 = vpop.xlane.xlu0 %1499 }
 0xa9b   : > { %v1501_v35 = vmul.f32 0.03125, %v1500_v11  ;;  %v1422_v36 = vmul.f32 %v1421_v34, %v1421_v34 }
 0xa9d   : > { %v1502_v37 = vsub.f32 %v1404_v31, %v1501_v35  ;;  %v1423_v38 = vsel %vm1416_vm6, %v1422_v36, 0.0 }
 0xa9e   : > { %1424 = vadd.xlane.f32.xlu1 %v1423_v38 }
 0xa9f   : > { %v1503_v13 = vmul.f32 %v1502_v37, %v1502_v37 }
 0xaa1   : > { %v1504_v39 = vsel %vm1416_vm6, %v1503_v13, 0.0 }
 0xaa2   : > { %1505 = vadd.xlane.f32.xlu1 %v1504_v39 }
 0xb2b   : > { %v1425_v43 = vpop.xlane.xlu1 %1424 }
 0xb2c   : > { %v1426_v44 = vmul.f32 0.03125, %v1425_v43 }
 0xb2e   : > { %v1427_v45 = vadd.f32 1e-05, %v1426_v44 }
 0xb2f   : > { %v1506_v57 = vpop.xlane.xlu1 %1505 }
 0xb30   : > { %1922 = vrsqrt.f32 %v1427_v45  ;;  %v1507_v46 = vmul.f32 0.03125, %v1506_v57 }
 0xb32   : > { %v1508_v62 = vadd.f32 1e-05, %v1507_v46 }
 0xb34   : > { %1924 = vrsqrt.f32 %v1508_v62 }
 0xb3a   : > { %v1923_v48 = vpop.eup %1922 }
 0xb3b   : > { %v1429_v49 = vmul.f32 %v1923_v48, %v1421_v34 }
 0xb3d   : > { %v1433_v52 = vmul.f32 %v1431_v47, %v1429_v49 }
 0xb3e   : > { %v1925_v53 = vpop.eup %1924 }
 0xb3f   : > { %v1436_v54 = vadd.f32 %v1434_v51, %v1433_v52  ;;  %v1510_v55 = vmul.f32 %v1925_v53, %v1502_v37 }
 0xb41   : > { %v1437_v56 = vpack.c.bf16 %v1436_v54, %v1436_v54  ;;  %v1511_v59 = vmul.f32 %v1510_v55, %v1431_v47 }
 0xb43   : > { %v1439_v60 = vshrl.u32 %v1437_v56, 16  ;;  %v1512_v61 = vadd.f32 %v1511_v59, %v1434_v51 }
 0xb45   : > { %v1441_v63 = vrot.slane %v1439_v60, 3  ;;  %v1513_v0 = vpack.c.bf16 %v1512_v61, %v1512_v61 }
 0xb47   : > { %1814 = vmatmul.mubr.msk.bf16.vlgmr.msra.gmra.mrb[0].mxu0 %vm352_vm1, %v1441_v63  ;;  %v1515_v1 = vshrl.u32 %v1513_v0, 16 }
 0xb49   : > { %v1517_v4 = vrot.slane %v1515_v1, 3 }
 0xb4b   : > { %1822 = vmatmul.mubr.msk.bf16.vlgmr.msra.gmra.mrb[0].mxu1 %vm352_vm1, %v1517_v4 }
 0xc1a   : > { %v1491_v5 = vpop.f32.mrb[0].mxu0 }
 0xc1b   : > { %1497 = vst [vmem:[#allocation3] sm:$0x1] %v1491_v5  ;;  %v1815_v6 = vpop.f32.mrb[1].mxu0 }
 0xc1c   : > { %v1494_v7 = vpop.f32.mrb[2].mxu0 }
 0xc1d   : > { %v1816_v8 = vpop.f32.mrb[3].mxu0 }
 0xc1e   : > { %v1555_v17 = vpop.f32.mrb[0].mxu1 }
 0xc1f   : > { %1561 = vst [vmem:[#allocation3 + $0x1] sm:$0x1] %v1555_v17  ;;  %v1823_v50 = vpop.f32.mrb[1].mxu1 }
 0xc20   : > { %v1558_v9 = vpop.f32.mrb[2].mxu1 }
 0xc21   : > { %v1824_v10 = vpop.f32.mrb[3].mxu1 }
 0xc22 PF: > { %p1829_p5 = scmp.eq.s32.totalorder %s2030_s10, 1  ;;  %s1973_s29 = smov [#allocation3]  }
 0xc23   : > { %s1569_s11 = sshll.u32 %s1973_s29, 4  ;;  %s1570_s11 = int_to_ptr.vmem [resolvable:$true] %s1569_s11 }
 0xc24   : > { %s1926_s12 = scalar_lea.vmem %s1570_s11, 32  ;;  %p1933_p9 = scmp.lt.s32.totalorder %s1570_s11, %s1570_s11 }
 0xc25   : > { %p1927_p6 = scmp.ne.s32.totalorder %s1570_s11, %s1926_s12  ;;  %p1934_p10 = scmp.lt.s32.totalorder %s1926_s12, %s1926_s12 }
 0xc27   : > { %p1928_p7 = pnand %p1927_p6, %p1829_p5  ;;  %p1935_p11 = por %p1934_p10, %p1933_p9 }
 0xc29   : > { %p1929_p8 = pneg %p1928_p7 }
 0xc2b   : > { %p1936_p12 = pnand %p1935_p11, %p1929_p8 }
 0xc2d   : > { %1939 = shalt.err (!%p1936_p12)
}
 0xc2e   : > { %s1940_s16 = scalar_lea.hbm %s2301_s9, 32 }
 0xc2f   : > { %p1941_p13 = scmp.ne.s32.totalorder %s2301_s9, %s1940_s16  ;;  %p1946_p2 = scmp.lt.u32.totalorder %s1940_s16, %s2301_s9 }
 0xc31   : > { %p1942_p0 = pnand %p1941_p13, %p1829_p5 }
 0xc33   : > { %p1943_p1 = pneg %p1942_p0 }
 0xc35   : > { %p1948_p3 = pnand %p1946_p2, %p1943_p1 }
 0xc37   : > { %1951 = shalt.err (!%p1948_p3)
}
 0xc38   : > { %1826 = dma.vmem_to_hbm [thread:$0]  (%p1829_p5), %s1570_s11, 32, %s2301_s9, [#allocation4]  }
 0xc39   : > { %1957 = dma.done.wait (%p1829_p5), [#allocation4], 32  }
 0xc3a   : > { %1959 = vsyncadd (%p1829_p5), [#allocation4], 4294967264 }
 0xc3b PF: > { %s20_s30 = sadd.s32 1, %s1962_s30  }
 0xc3c   : > { %p17_p4 = scmp.ge.s32.totalorder %s20_s30, 4  }
 0xc3e   :  { %19 = sbr.rel (!%p17_p4) target bundleno = 1 (0x1), region = 93 }
 0xc45   :  { %1582 = vsyncpa [#allocation4], 1 }
 0xc46   :  { %1584 = vsyncpa [#allocation4 + $0x1], 1 }

</bundles_post_ra>
